<compile_context>
chip_gen: v7x
topology: tpu7x:2x2x1
jax: 0.10.0
libtpu: 0.0.40
codegen_flags: <defaults>
</compile_context>

<pallas_src>
import functools

import jax
import jax.numpy as jnp
from jax.experimental import pallas as pl
from jax.experimental.pallas import tpu as pltpu

# Row layout of the packed (8, C) per-channel parameter table.
_N1_G, _N1_B, _B_PROJ, _LS1, _N2_G, _N2_B, _B2, _LS2 = range(8)

_INV_SQRT2 = 0.7071067811865476


def _layernorm(x, gamma, beta, eps):
    # x: (N, C) f32; gamma/beta: (1, C) f32. Biased variance, like nn.LayerNorm.
    mu = jnp.mean(x, axis=-1, keepdims=True)
    xc = x - mu
    var = jnp.mean(xc * xc, axis=-1, keepdims=True)
    return xc * jax.lax.rsqrt(var + eps) * gamma + beta


def _erf(x):
    # Abramowitz & Stegun 7.1.26 polynomial erf (|err| < 1.5e-7), built only
    # from ops with guaranteed Mosaic lowerings.  The divide is offloaded to
    # the EUP via pl.reciprocal(approx=True); the rest stays pure f32 VALU.
    a1, a2, a3, a4, a5 = (0.254829592, -0.284496736, 1.421413741,
                          -1.453152027, 1.061405429)
    p = 0.3275911
    ax = jnp.abs(x)
    t = pl.reciprocal(1.0 + p * ax, approx=True)
    poly = ((((a5 * t + a4) * t + a3) * t + a2) * t + a1) * t
    y = 1.0 - poly * jnp.exp(-ax * ax)
    return jnp.where(x >= 0.0, y, -y)


def _gelu_exact(x):
    # Matches nn.GELU() default (erf-based), not the tanh approximation.
    return 0.5 * x * (1.0 + _erf(x * _INV_SQRT2))


def _block_kernel(x_ref, wq_ref, wk_ref, wv_ref, wproj_ref, w1_ref, w2_ref,
                  vec_ref, b1_ref, o_ref, *, scale, eps):
    vecs = vec_ref[...]                                     # (8, C) f32
    row = lambda i: vecs[i:i + 1, :]                        # (1, C) slices

    # ---- LayerNorm1 (once per batch item, bf16 cached once) ----
    x = x_ref[0].astype(jnp.float32)                        # (N, C)
    xn_bf = _layernorm(x, row(_N1_G), row(_N1_B), eps).astype(jnp.bfloat16)

    # ---- multi-head self-attention, all heads in one step ----
    num_heads = wq_ref.shape[0]
    # Leading-batch-dim broadcast -> every einsum below is a plain batched
    # dot_general (no in-kernel reshape/transpose and no lane-slicing of a
    # packed (N, 3C) qkv at non-128-aligned offsets).
    xn_h = jnp.broadcast_to(xn_bf[None, :, :],
                            (num_heads,) + xn_bf.shape)     # (H, N, C) bf16

    q = jnp.einsum('hnc,hcd->hnd', xn_h, wq_ref[...],
                   preferred_element_type=jnp.float32)      # (H, N, hd)
    k = jnp.einsum('hnc,hcd->hnd', xn_h, wk_ref[...],
                   preferred_element_type=jnp.float32)
    v = jnp.einsum('hnc,hcd->hnd', xn_h, wv_ref[...],
                   preferred_element_type=jnp.float32)

    s = jnp.einsum('hnd,hmd->hnm', q.astype(jnp.bfloat16),
                   k.astype(jnp.bfloat16),
                   preferred_element_type=jnp.float32) * scale   # (H, N, N)
    s = s - jnp.max(s, axis=-1, keepdims=True)
    p = jnp.exp(s)
    p = p * pl.reciprocal(jnp.sum(p, axis=-1, keepdims=True), approx=True)

    ctx = jnp.einsum('hnm,hmd->hnd', p.astype(jnp.bfloat16),
                     v.astype(jnp.bfloat16),
                     preferred_element_type=jnp.float32)    # (H, N, hd)

    # Deferred output projection, fused in-register:
    #   sum_h ctx_h @ Wproj[h*hd:(h+1)*hd, :]  ==  concat_h(ctx_h) @ Wproj
    # (per-head contraction avoids an (H,N,hd)->(N,C) relayout; no per-head
    #  f32 scratch round-trips remain, which removes the old vst traffic).
    proj_h = jnp.einsum('hnd,hdc->hnc', ctx.astype(jnp.bfloat16),
                        wproj_ref[...],
                        preferred_element_type=jnp.float32)  # (H, N, C)
    attn_out = jnp.sum(proj_h, axis=0) + row(_B_PROJ)        # (N, C)

    y1 = x + row(_LS1) * attn_out                            # residual + ls1

    # ---- LayerNorm2 + MLP (exact GELU) + residual + ls2 ----
    xn2_bf = _layernorm(y1, row(_N2_G), row(_N2_B), eps).astype(jnp.bfloat16)
    hmid = jnp.dot(xn2_bf, w1_ref[...],
                   preferred_element_type=jnp.float32) + b1_ref[...]
    hact = _gelu_exact(hmid)                                 # f32 elementwise
    m = jnp.dot(hact.astype(jnp.bfloat16), w2_ref[...],
                preferred_element_type=jnp.float32) + row(_B2)
    out = y1 + row(_LS2) * m
    o_ref[0] = out.astype(o_ref.dtype)


def block_forward_pallas(x, params, num_heads):
    """x: (B, N, C); params: dict of f32 weights in input-major layout."""
    B, N, C = x.shape
    assert C % num_heads == 0
    head_dim = C // num_heads
    hidden = params["w1_t"].shape[1]
    scale = head_dim ** -0.5

    # One-time host-side weight re-arrangement into per-head slabs (bf16 for
    # the MXU; halves resident-weight VMEM, which matters on v7x's 64 MiB).
    wqkv = params["w_qkv_t"]                                 # (C, 3C): [q|k|v]
    def per_head(w):                                         # (C, C) -> (H, C, hd)
        return jnp.transpose(w.reshape(C, num_heads, head_dim),
                             (1, 0, 2)).astype(jnp.bfloat16)
    wq_heads = per_head(wqkv[:, :C])
    wk_heads = per_head(wqkv[:, C:2 * C])
    wv_heads = per_head(wqkv[:, 2 * C:])
    wproj_heads = params["w_proj_t"].reshape(
        num_heads, head_dim, C).astype(jnp.bfloat16)         # (H, hd, C)
    w1_bf = params["w1_t"].astype(jnp.bfloat16)              # (C, hidden)
    w2_bf = params["w2_t"].astype(jnp.bfloat16)              # (hidden, C)

    vecs = jnp.stack([params["norm1_g"], params["norm1_b"], params["b_proj"],
                      params["ls1_g"], params["norm2_g"], params["norm2_b"],
                      params["b2"], params["ls2_g"]]).astype(jnp.float32)
    b1 = params["b1"].reshape(1, hidden).astype(jnp.float32)

    kernel = functools.partial(_block_kernel, scale=scale, eps=1e-5)

    # Grid-invariant operands: constant index map + single-buffered.
    const2 = lambda shape: pl.BlockSpec(shape, lambda b: (0, 0),
                                        pipeline_mode=pl.Buffered(1))
    const3 = lambda shape: pl.BlockSpec(shape, lambda b: (0, 0, 0),
                                        pipeline_mode=pl.Buffered(1))

    return pl.pallas_call(
        kernel,
        out_shape=jax.ShapeDtypeStruct((B, N, C), x.dtype),
        grid_spec=pltpu.PrefetchScalarGridSpec(
            num_scalar_prefetch=0,
            grid=(B,),                                       # one step / item
            in_specs=[
                pl.BlockSpec((1, N, C), lambda b: (b, 0, 0)),
                const3((num_heads, C, head_dim)),            # Wq
                const3((num_heads, C, head_dim)),            # Wk
                const3((num_heads, C, head_dim)),            # Wv
                const3((num_heads, head_dim, C)),            # Wproj
                const2((C, hidden)),                         # W1
                const2((hidden, C)),                         # W2
                const2((8, C)),                              # packed vectors
                const2((1, hidden)),                         # b1
            ],
            out_specs=pl.BlockSpec((1, N, C), lambda b: (b, 0, 0)),
        ),
        compiler_params=pltpu.CompilerParams(
            dimension_semantics=("parallel",),               # megacore on v7x
            vmem_limit_bytes=32 * 1024 * 1024),
    )(x, wq_heads, wk_heads, wv_heads, wproj_heads, w1_bf, w2_bf, vecs, b1)


def block_forward_reference(x, params, num_heads):
    """Pure-JAX f32 reference mirroring the PyTorch Block.forward."""
    B, N, C = x.shape
    head_dim = C // num_heads
    scale = head_dim ** -0.5
    eps = 1e-5

    def ln(v, g, b):
        mu = v.mean(-1, keepdims=True)
        var = ((v - mu) ** 2).mean(-1, keepdims=True)
        return (v - mu) / jnp.sqrt(var + eps) * g + b

    xn = ln(x, params["norm1_g"], params["norm1_b"])
    qkv = xn @ params["w_qkv_t"]
    qkv = qkv.reshape(B, N, 3, num_heads, head_dim).transpose(2, 0, 3, 1, 4)
    q, k, v = qkv[0] * scale, qkv[1], qkv[2]
    attn = jax.nn.softmax(q @ jnp.swapaxes(k, -2, -1), axis=-1)
    ctx = jnp.swapaxes(attn @ v, 1, 2).reshape(B, N, C)
    attn_out = ctx @ params["w_proj_t"] + params["b_proj"]
    y1 = x + params["ls1_g"] * attn_out

    xn2 = ln(y1, params["norm2_g"], params["norm2_b"])
    hmid = xn2 @ params["w1_t"] + params["b1"]
    hact = jax.nn.gelu(hmid, approximate=False)   # exact GELU (nn.GELU default)
    m = hact @ params["w2_t"] + params["b2"]
    return y1 + params["ls2_g"] * m


def _trunc_normal(key, shape, std=0.02):
    return std * jax.random.truncated_normal(key, -2.0, 2.0, shape, jnp.float32)


if __name__ == "__main__":
    # Small shapes consistent with the module: B=2, seq N=8, dim C=32, 8 heads,
    # mlp_ratio=4 -> hidden=128.
    B, N, C = 2, 8, 32
    num_heads = 8
    hidden = int(C * 4.0)

    keys = jax.random.split(jax.random.PRNGKey(0), 16)
    x = jax.random.normal(keys[0], (B, N, C), dtype=jnp.float32)

    # Parameters are runtime inputs; LayerScale gammas are given O(1) values so
    # both branches contribute measurably (the module's init value is 1e-5).
    params = dict(
        norm1_g=1.0 + 0.1 * jax.random.normal(keys[1], (C,)),
        norm1_b=0.1 * jax.random.normal(keys[2], (C,)),
        w_qkv_t=_trunc_normal(keys[3], (C, 3 * C)),   # qkv_bias=False -> no bias
        w_proj_t=_trunc_normal(keys[4], (C, C)),
        b_proj=0.1 * jax.random.normal(keys[5], (C,)),
        ls1_g=jax.random.uniform(keys[6], (C,), minval=0.5, maxval=1.5),
        norm2_g=1.0 + 0.1 * jax.random.normal(keys[7], (C,)),
        norm2_b=0.1 * jax.random.normal(keys[8], (C,)),
        w1_t=_trunc_normal(keys[9], (C, hidden)),
        b1=0.1 * jax.random.normal(keys[10], (hidden,)),
        w2_t=_trunc_normal(keys[11], (hidden, C)),
        b2=0.1 * jax.random.normal(keys[12], (C,)),
        ls2_g=jax.random.uniform(keys[13], (C,), minval=0.5, maxval=1.5),
    )

    out = block_forward_pallas(x, params, num_heads)
    out = jax.block_until_ready(out)

    ref = block_forward_reference(x, params, num_heads)
    assert out.shape == (B, N, C)
    # bf16 MXU operands + approx reciprocals in the kernel vs a full-f32
    # reference -> loose-but-tight-enough tolerance.
    assert jnp.allclose(out, ref, atol=1e-2, rtol=1e-2), (
        "mismatch vs reference; max abs diff = %g"
        % float(jnp.max(jnp.abs(out - ref))))

    print("KERNEL_OK")
</pallas_src>

<mosaic_0001>
module attributes {stable_mosaic.version = 11 : i64} {
  func.func @_block_kernel(%arg0: i32, %arg1: memref<1x8x32xf32, #tpu.memory_space<vmem>>, %arg2: memref<8x32x4xbf16, #tpu.memory_space<vmem>>, %arg3: memref<8x32x4xbf16, #tpu.memory_space<vmem>>, %arg4: memref<8x32x4xbf16, #tpu.memory_space<vmem>>, %arg5: memref<8x4x32xbf16, #tpu.memory_space<vmem>>, %arg6: memref<32x128xbf16, #tpu.memory_space<vmem>>, %arg7: memref<128x32xbf16, #tpu.memory_space<vmem>>, %arg8: memref<8x32xf32, #tpu.memory_space<vmem>>, %arg9: memref<1x128xf32, #tpu.memory_space<vmem>>, %arg10: memref<1x8x32xf32, #tpu.memory_space<vmem>>) attributes {dimension_semantics = [#tpu.dimension_semantics<parallel>], iteration_bounds = array<i64: 2>, scalar_prefetch = 0 : i64, scratch_operands = 0 : i64, tpu.core_type = #tpu.core_type<tc>, window_params = [{transform_indices = @transform_0, window_bounds = array<i64: 1, 8, 32>}, {pipeline_mode = #tpu.pipeline_mode<synchronous>, transform_indices = @transform_1, window_bounds = array<i64: 8, 32, 4>}, {pipeline_mode = #tpu.pipeline_mode<synchronous>, transform_indices = @transform_2, window_bounds = array<i64: 8, 32, 4>}, {pipeline_mode = #tpu.pipeline_mode<synchronous>, transform_indices = @transform_3, window_bounds = array<i64: 8, 32, 4>}, {pipeline_mode = #tpu.pipeline_mode<synchronous>, transform_indices = @transform_4, window_bounds = array<i64: 8, 4, 32>}, {pipeline_mode = #tpu.pipeline_mode<synchronous>, transform_indices = @transform_5, window_bounds = array<i64: 32, 128>}, {pipeline_mode = #tpu.pipeline_mode<synchronous>, transform_indices = @transform_6, window_bounds = array<i64: 128, 32>}, {pipeline_mode = #tpu.pipeline_mode<synchronous>, transform_indices = @transform_7, window_bounds = array<i64: 8, 32>}, {pipeline_mode = #tpu.pipeline_mode<synchronous>, transform_indices = @transform_8, window_bounds = array<i64: 1, 128>}, {transform_indices = @transform_9, window_bounds = array<i64: 1, 8, 32>}]} {
    %c0 = arith.constant 0 : index
    %c0_0 = arith.constant 0 : index
    %0 = vector.load %arg8[%c0, %c0_0] : memref<8x32xf32, #tpu.memory_space<vmem>>, vector<8x32xf32>
    %c0_1 = arith.constant 0 : index
    %c0_2 = arith.constant 0 : index
    %c0_3 = arith.constant 0 : index
    %1 = vector.load %arg1[%c0_1, %c0_2, %c0_3] : memref<1x8x32xf32, #tpu.memory_space<vmem>>, vector<1x8x32xf32>
    %2 = vector.shape_cast %1 : vector<1x8x32xf32> to vector<8x32xf32>
    %3 = vector.extract_strided_slice %0 {offsets = [0, 0], sizes = [1, 32], strides = [1, 1]} : vector<8x32xf32> to vector<1x32xf32>
    %4 = vector.extract_strided_slice %0 {offsets = [1, 0], sizes = [1, 32], strides = [1, 1]} : vector<8x32xf32> to vector<1x32xf32>
    %cst = arith.constant dense<0.000000e+00> : vector<8xf32>
    %5 = vector.multi_reduction <add>, %2, %cst [1] : vector<8x32xf32> to vector<8xf32>
    %6 = vector.shape_cast %5 : vector<8xf32> to vector<8x1xf32>
    %cst_4 = arith.constant 3.200000e+01 : f32
    %7 = vector.broadcast %cst_4 : f32 to vector<8x1xf32>
    %8 = arith.divf %6, %7 : vector<8x1xf32>
    %9 = vector.broadcast %8 : vector<8x1xf32> to vector<8x32xf32>
    %10 = arith.subf %2, %9 : vector<8x32xf32>
    %11 = arith.mulf %10, %10 : vector<8x32xf32>
    %cst_5 = arith.constant dense<0.000000e+00> : vector<8xf32>
    %12 = vector.multi_reduction <add>, %11, %cst_5 [1] : vector<8x32xf32> to vector<8xf32>
    %13 = vector.shape_cast %12 : vector<8xf32> to vector<8x1xf32>
    %cst_6 = arith.constant 3.200000e+01 : f32
    %14 = vector.broadcast %cst_6 : f32 to vector<8x1xf32>
    %15 = arith.divf %13, %14 : vector<8x1xf32>
    %cst_7 = arith.constant 9.99999974E-6 : f32
    %16 = vector.broadcast %cst_7 : f32 to vector<8x1xf32>
    %17 = arith.addf %15, %16 : vector<8x1xf32>
    %18 = math.rsqrt %17 : vector<8x1xf32>
    %19 = vector.broadcast %18 : vector<8x1xf32> to vector<8x32xf32>
    %20 = arith.mulf %10, %19 : vector<8x32xf32>
    %21 = vector.broadcast %3 : vector<1x32xf32> to vector<8x32xf32>
    %22 = arith.mulf %20, %21 : vector<8x32xf32>
    %23 = vector.broadcast %4 : vector<1x32xf32> to vector<8x32xf32>
    %24 = arith.addf %22, %23 : vector<8x32xf32>
    %25 = arith.truncf %24 : vector<8x32xf32> to vector<8x32xbf16>
    %26 = vector.shape_cast %25 : vector<8x32xbf16> to vector<1x8x32xbf16>
    %27 = vector.shape_cast %26 : vector<1x8x32xbf16> to vector<1x8x32xbf16>
    %28 = vector.broadcast %27 : vector<1x8x32xbf16> to vector<8x8x32xbf16>
    %c0_8 = arith.constant 0 : index
    %c0_9 = arith.constant 0 : index
    %c0_10 = arith.constant 0 : index
    %29 = vector.load %arg2[%c0_8, %c0_9, %c0_10] : memref<8x32x4xbf16, #tpu.memory_space<vmem>>, vector<8x32x4xbf16>
    "tpu.trace_start"() <{level = 10 : i32, message = "hnc,hcd->hnd"}> : () -> ()
    %cst_11 = arith.constant dense<0.000000e+00> : vector<8x8x4xf32>
    %30 = tpu.matmul %28, %29, %cst_11 {dimension_numbers = #tpu.dot_dimension_numbers<[2], [1], [1], [2], [0, 0, 0, 1, 1, 2], [0], [0]>} : vector<8x8x32xbf16>, vector<8x32x4xbf16>, vector<8x8x4xf32> -> vector<8x8x4xf32>
    "tpu.trace_stop"() : () -> ()
    %c0_12 = arith.constant 0 : index
    %c0_13 = arith.constant 0 : index
    %c0_14 = arith.constant 0 : index
    %31 = vector.load %arg3[%c0_12, %c0_13, %c0_14] : memref<8x32x4xbf16, #tpu.memory_space<vmem>>, vector<8x32x4xbf16>
    "tpu.trace_start"() <{level = 10 : i32, message = "hnc,hcd->hnd"}> : () -> ()
    %cst_15 = arith.constant dense<0.000000e+00> : vector<8x8x4xf32>
    %32 = tpu.matmul %28, %31, %cst_15 {dimension_numbers = #tpu.dot_dimension_numbers<[2], [1], [1], [2], [0, 0, 0, 1, 1, 2], [0], [0]>} : vector<8x8x32xbf16>, vector<8x32x4xbf16>, vector<8x8x4xf32> -> vector<8x8x4xf32>
    "tpu.trace_stop"() : () -> ()
    %c0_16 = arith.constant 0 : index
    %c0_17 = arith.constant 0 : index
    %c0_18 = arith.constant 0 : index
    %33 = vector.load %arg4[%c0_16, %c0_17, %c0_18] : memref<8x32x4xbf16, #tpu.memory_space<vmem>>, vector<8x32x4xbf16>
    "tpu.trace_start"() <{level = 10 : i32, message = "hnc,hcd->hnd"}> : () -> ()
    %cst_19 = arith.constant dense<0.000000e+00> : vector<8x8x4xf32>
    %34 = tpu.matmul %28, %33, %cst_19 {dimension_numbers = #tpu.dot_dimension_numbers<[2], [1], [1], [2], [0, 0, 0, 1, 1, 2], [0], [0]>} : vector<8x8x32xbf16>, vector<8x32x4xbf16>, vector<8x8x4xf32> -> vector<8x8x4xf32>
    "tpu.trace_stop"() : () -> ()
    %35 = arith.truncf %30 : vector<8x8x4xf32> to vector<8x8x4xbf16>
    %36 = arith.truncf %32 : vector<8x8x4xf32> to vector<8x8x4xbf16>
    "tpu.trace_start"() <{level = 10 : i32, message = "hnd,hmd->hnm"}> : () -> ()
    %cst_20 = arith.constant dense<0.000000e+00> : vector<8x8x8xf32>
    %37 = tpu.matmul %35, %36, %cst_20 {dimension_numbers = #tpu.dot_dimension_numbers<[2], [2], [1], [1], [0, 0, 0, 1, 1, 1], [0], [0]>} : vector<8x8x4xbf16>, vector<8x8x4xbf16>, vector<8x8x8xf32> -> vector<8x8x8xf32>
    "tpu.trace_stop"() : () -> ()
    %cst_21 = arith.constant 5.000000e-01 : f32
    %38 = vector.broadcast %cst_21 : f32 to vector<8x8x8xf32>
    %39 = arith.mulf %37, %38 : vector<8x8x8xf32>
    %cst_22 = arith.constant dense<0xFF800000> : vector<8x8xf32>
    %40 = vector.multi_reduction <maximumf>, %39, %cst_22 [2] : vector<8x8x8xf32> to vector<8x8xf32>
    %41 = vector.shape_cast %40 : vector<8x8xf32> to vector<8x8x1xf32>
    %42 = vector.broadcast %41 : vector<8x8x1xf32> to vector<8x8x8xf32>
    %43 = arith.subf %39, %42 : vector<8x8x8xf32>
    %44 = math.exp %43 : vector<8x8x8xf32>
    %cst_23 = arith.constant dense<0.000000e+00> : vector<8x8xf32>
    %45 = vector.multi_reduction <add>, %44, %cst_23 [2] : vector<8x8x8xf32> to vector<8x8xf32>
    %46 = vector.shape_cast %45 : vector<8x8xf32> to vector<8x8x1xf32>
    %47 = tpu.reciprocal %46 {approx = true} : vector<8x8x1xf32> -> vector<8x8x1xf32>
    %48 = vector.broadcast %47 : vector<8x8x1xf32> to vector<8x8x8xf32>
    %49 = arith.mulf %44, %48 : vector<8x8x8xf32>
    %50 = arith.truncf %49 : vector<8x8x8xf32> to vector<8x8x8xbf16>
    %51 = arith.truncf %34 : vector<8x8x4xf32> to vector<8x8x4xbf16>
    "tpu.trace_start"() <{level = 10 : i32, message = "hnm,hmd->hnd"}> : () -> ()
    %cst_24 = arith.constant dense<0.000000e+00> : vector<8x8x4xf32>
    %52 = tpu.matmul %50, %51, %cst_24 {dimension_numbers = #tpu.dot_dimension_numbers<[2], [1], [1], [2], [0, 0, 0, 1, 1, 2], [0], [0]>} : vector<8x8x8xbf16>, vector<8x8x4xbf16>, vector<8x8x4xf32> -> vector<8x8x4xf32>
    "tpu.trace_stop"() : () -> ()
    %53 = arith.truncf %52 : vector<8x8x4xf32> to vector<8x8x4xbf16>
    %c0_25 = arith.constant 0 : index
    %c0_26 = arith.constant 0 : index
    %c0_27 = arith.constant 0 : index
    %54 = vector.load %arg5[%c0_25, %c0_26, %c0_27] : memref<8x4x32xbf16, #tpu.memory_space<vmem>>, vector<8x4x32xbf16>
    "tpu.trace_start"() <{level = 10 : i32, message = "hnd,hdc->hnc"}> : () -> ()
    %cst_28 = arith.constant dense<0.000000e+00> : vector<8x8x32xf32>
    %55 = tpu.matmul %53, %54, %cst_28 {dimension_numbers = #tpu.dot_dimension_numbers<[2], [1], [1], [2], [0, 0, 0, 1, 1, 2], [0], [0]>} : vector<8x8x4xbf16>, vector<8x4x32xbf16>, vector<8x8x32xf32> -> vector<8x8x32xf32>
    "tpu.trace_stop"() : () -> ()
    %cst_29 = arith.constant dense<0.000000e+00> : vector<8x32xf32>
    %56 = vector.multi_reduction <add>, %55, %cst_29 [0] : vector<8x8x32xf32> to vector<8x32xf32>
    %57 = vector.extract_strided_slice %0 {offsets = [2, 0], sizes = [1, 32], strides = [1, 1]} : vector<8x32xf32> to vector<1x32xf32>
    %58 = vector.broadcast %57 : vector<1x32xf32> to vector<8x32xf32>
    %59 = arith.addf %56, %58 : vector<8x32xf32>
    %60 = vector.extract_strided_slice %0 {offsets = [3, 0], sizes = [1, 32], strides = [1, 1]} : vector<8x32xf32> to vector<1x32xf32>
    %61 = vector.broadcast %60 : vector<1x32xf32> to vector<8x32xf32>
    %62 = arith.mulf %61, %59 : vector<8x32xf32>
    %63 = arith.addf %2, %62 : vector<8x32xf32>
    %64 = vector.extract_strided_slice %0 {offsets = [4, 0], sizes = [1, 32], strides = [1, 1]} : vector<8x32xf32> to vector<1x32xf32>
    %65 = vector.extract_strided_slice %0 {offsets = [5, 0], sizes = [1, 32], strides = [1, 1]} : vector<8x32xf32> to vector<1x32xf32>
    %cst_30 = arith.constant dense<0.000000e+00> : vector<8xf32>
    %66 = vector.multi_reduction <add>, %63, %cst_30 [1] : vector<8x32xf32> to vector<8xf32>
    %67 = vector.shape_cast %66 : vector<8xf32> to vector<8x1xf32>
    %cst_31 = arith.constant 3.200000e+01 : f32
    %68 = vector.broadcast %cst_31 : f32 to vector<8x1xf32>
    %69 = arith.divf %67, %68 : vector<8x1xf32>
    %70 = vector.broadcast %69 : vector<8x1xf32> to vector<8x32xf32>
    %71 = arith.subf %63, %70 : vector<8x32xf32>
    %72 = arith.mulf %71, %71 : vector<8x32xf32>
    %cst_32 = arith.constant dense<0.000000e+00> : vector<8xf32>
    %73 = vector.multi_reduction <add>, %72, %cst_32 [1] : vector<8x32xf32> to vector<8xf32>
    %74 = vector.shape_cast %73 : vector<8xf32> to vector<8x1xf32>
    %cst_33 = arith.constant 3.200000e+01 : f32
    %75 = vector.broadcast %cst_33 : f32 to vector<8x1xf32>
    %76 = arith.divf %74, %75 : vector<8x1xf32>
    %cst_34 = arith.constant 9.99999974E-6 : f32
    %77 = vector.broadcast %cst_34 : f32 to vector<8x1xf32>
    %78 = arith.addf %76, %77 : vector<8x1xf32>
    %79 = math.rsqrt %78 : vector<8x1xf32>
    %80 = vector.broadcast %79 : vector<8x1xf32> to vector<8x32xf32>
    %81 = arith.mulf %71, %80 : vector<8x32xf32>
    %82 = vector.broadcast %64 : vector<1x32xf32> to vector<8x32xf32>
    %83 = arith.mulf %81, %82 : vector<8x32xf32>
    %84 = vector.broadcast %65 : vector<1x32xf32> to vector<8x32xf32>
    %85 = arith.addf %83, %84 : vector<8x32xf32>
    %86 = arith.truncf %85 : vector<8x32xf32> to vector<8x32xbf16>
    %c0_35 = arith.constant 0 : index
    %c0_36 = arith.constant 0 : index
    %87 = vector.load %arg6[%c0_35, %c0_36] : memref<32x128xbf16, #tpu.memory_space<vmem>>, vector<32x128xbf16>
    %cst_37 = arith.constant dense<0.000000e+00> : vector<8x128xf32>
    %88 = tpu.matmul %86, %87, %cst_37 {dimension_numbers = #tpu.dot_dimension_numbers<[1], [0], [0], [1], [0, 0, 1, 1], [], []>} : vector<8x32xbf16>, vector<32x128xbf16>, vector<8x128xf32> -> vector<8x128xf32>
    %c0_38 = arith.constant 0 : index
    %c0_39 = arith.constant 0 : index
    %89 = vector.load %arg9[%c0_38, %c0_39] : memref<1x128xf32, #tpu.memory_space<vmem>>, vector<1x128xf32>
    %90 = vector.broadcast %89 : vector<1x128xf32> to vector<8x128xf32>
    %91 = arith.addf %88, %90 : vector<8x128xf32>
    %cst_40 = arith.constant 5.000000e-01 : f32
    %92 = vector.broadcast %cst_40 : f32 to vector<8x128xf32>
    %93 = arith.mulf %92, %91 : vector<8x128xf32>
    %cst_41 = arith.constant 0.707106769 : f32
    %94 = vector.broadcast %cst_41 : f32 to vector<8x128xf32>
    %95 = arith.mulf %91, %94 : vector<8x128xf32>
    %96 = math.absf %95 : vector<8x128xf32>
    %cst_42 = arith.constant 0.327591091 : f32
    %97 = vector.broadcast %cst_42 : f32 to vector<8x128xf32>
    %98 = arith.mulf %97, %96 : vector<8x128xf32>
    %cst_43 = arith.constant 1.000000e+00 : f32
    %99 = vector.broadcast %cst_43 : f32 to vector<8x128xf32>
    %100 = arith.addf %99, %98 : vector<8x128xf32>
    %101 = tpu.reciprocal %100 {approx = true} : vector<8x128xf32> -> vector<8x128xf32>
    %cst_44 = arith.constant 1.06140542 : f32
    %102 = vector.broadcast %cst_44 : f32 to vector<8x128xf32>
    %103 = arith.mulf %102, %101 : vector<8x128xf32>
    %cst_45 = arith.constant -1.45315206 : f32
    %104 = vector.broadcast %cst_45 : f32 to vector<8x128xf32>
    %105 = arith.addf %103, %104 : vector<8x128xf32>
    %106 = arith.mulf %105, %101 : vector<8x128xf32>
    %cst_46 = arith.constant 1.42141378 : f32
    %107 = vector.broadcast %cst_46 : f32 to vector<8x128xf32>
    %108 = arith.addf %106, %107 : vector<8x128xf32>
    %109 = arith.mulf %108, %101 : vector<8x128xf32>
    %cst_47 = arith.constant -0.284496725 : f32
    %110 = vector.broadcast %cst_47 : f32 to vector<8x128xf32>
    %111 = arith.addf %109, %110 : vector<8x128xf32>
    %112 = arith.mulf %111, %101 : vector<8x128xf32>
    %cst_48 = arith.constant 0.254829586 : f32
    %113 = vector.broadcast %cst_48 : f32 to vector<8x128xf32>
    %114 = arith.addf %112, %113 : vector<8x128xf32>
    %115 = arith.mulf %114, %101 : vector<8x128xf32>
    %cst_49 = arith.constant 0.000000e+00 : f32
    %116 = vector.broadcast %cst_49 : f32 to vector<8x128xf32>
    %117 = arith.subf %116, %96 : vector<8x128xf32>
    %118 = arith.mulf %117, %96 : vector<8x128xf32>
    %119 = math.exp %118 : vector<8x128xf32>
    %120 = arith.mulf %115, %119 : vector<8x128xf32>
    %cst_50 = arith.constant 1.000000e+00 : f32
    %121 = vector.broadcast %cst_50 : f32 to vector<8x128xf32>
    %122 = arith.subf %121, %120 : vector<8x128xf32>
    %cst_51 = arith.constant 0.000000e+00 : f32
    %123 = vector.broadcast %cst_51 : f32 to vector<8x128xf32>
    %124 = arith.cmpf oge, %95, %123 : vector<8x128xf32>
    %cst_52 = arith.constant 0.000000e+00 : f32
    %125 = vector.broadcast %cst_52 : f32 to vector<8x128xf32>
    %126 = arith.subf %125, %122 : vector<8x128xf32>
    %127 = arith.select %124, %122, %126 : vector<8x128xi1>, vector<8x128xf32>
    %cst_53 = arith.constant 1.000000e+00 : f32
    %128 = vector.broadcast %cst_53 : f32 to vector<8x128xf32>
    %129 = arith.addf %128, %127 : vector<8x128xf32>
    %130 = arith.mulf %93, %129 : vector<8x128xf32>
    %131 = arith.truncf %130 : vector<8x128xf32> to vector<8x128xbf16>
    %c0_54 = arith.constant 0 : index
    %c0_55 = arith.constant 0 : index
    %132 = vector.load %arg7[%c0_54, %c0_55] : memref<128x32xbf16, #tpu.memory_space<vmem>>, vector<128x32xbf16>
    %cst_56 = arith.constant dense<0.000000e+00> : vector<8x32xf32>
    %133 = tpu.matmul %131, %132, %cst_56 {dimension_numbers = #tpu.dot_dimension_numbers<[1], [0], [0], [1], [0, 0, 1, 1], [], []>} : vector<8x128xbf16>, vector<128x32xbf16>, vector<8x32xf32> -> vector<8x32xf32>
    %134 = vector.extract_strided_slice %0 {offsets = [6, 0], sizes = [1, 32], strides = [1, 1]} : vector<8x32xf32> to vector<1x32xf32>
    %135 = vector.broadcast %134 : vector<1x32xf32> to vector<8x32xf32>
    %136 = arith.addf %133, %135 : vector<8x32xf32>
    %137 = vector.extract_strided_slice %0 {offsets = [7, 0], sizes = [1, 32], strides = [1, 1]} : vector<8x32xf32> to vector<1x32xf32>
    %138 = vector.broadcast %137 : vector<1x32xf32> to vector<8x32xf32>
    %139 = arith.mulf %138, %136 : vector<8x32xf32>
    %140 = arith.addf %63, %139 : vector<8x32xf32>
    %c0_57 = arith.constant 0 : index
    %c0_58 = arith.constant 0 : index
    %c0_59 = arith.constant 0 : index
    %141 = vector.load %arg10[%c0_57, %c0_58, %c0_59] : memref<1x8x32xf32, #tpu.memory_space<vmem>>, vector<1x8x32xf32>
    %142 = vector.shape_cast %141 : vector<1x8x32xf32> to vector<8x32xf32>
    %143 = vector.shape_cast %140 : vector<8x32xf32> to vector<1x8x32xf32>
    tpu.vector_store %arg10[%c0_57, %c0_58, %c0_59], %143 {strides = array<i32>} : memref<1x8x32xf32, #tpu.memory_space<vmem>>, vector<1x8x32xf32>,
    return
  }
  func.func @transform_0(%arg0: i32) -> (i32, i32, i32) {
    %c0_i32 = arith.constant 0 : i32
    %c0_i32_0 = arith.constant 0 : i32
    %c0_i32_1 = arith.constant 0 : i32
    return %arg0, %c0_i32, %c0_i32_0 : i32, i32, i32
  }
  func.func @transform_1(%arg0: i32) -> (i32, i32, i32) {
    %c0_i32 = arith.constant 0 : i32
    %c0_i32_0 = arith.constant 0 : i32
    %c0_i32_1 = arith.constant 0 : i32
    %c0_i32_2 = arith.constant 0 : i32
    return %c0_i32, %c0_i32_0, %c0_i32_1 : i32, i32, i32
  }
  func.func @transform_2(%arg0: i32) -> (i32, i32, i32) {
    %c0_i32 = arith.constant 0 : i32
    %c0_i32_0 = arith.constant 0 : i32
    %c0_i32_1 = arith.constant 0 : i32
    %c0_i32_2 = arith.constant 0 : i32
    return %c0_i32, %c0_i32_0, %c0_i32_1 : i32, i32, i32
  }
  func.func @transform_3(%arg0: i32) -> (i32, i32, i32) {
    %c0_i32 = arith.constant 0 : i32
    %c0_i32_0 = arith.constant 0 : i32
    %c0_i32_1 = arith.constant 0 : i32
    %c0_i32_2 = arith.constant 0 : i32
    return %c0_i32, %c0_i32_0, %c0_i32_1 : i32, i32, i32
  }
  func.func @transform_4(%arg0: i32) -> (i32, i32, i32) {
    %c0_i32 = arith.constant 0 : i32
    %c0_i32_0 = arith.constant 0 : i32
    %c0_i32_1 = arith.constant 0 : i32
    %c0_i32_2 = arith.constant 0 : i32
    return %c0_i32, %c0_i32_0, %c0_i32_1 : i32, i32, i32
  }
  func.func @transform_5(%arg0: i32) -> (i32, i32) {
    %c0_i32 = arith.constant 0 : i32
    %c0_i32_0 = arith.constant 0 : i32
    %c0_i32_1 = arith.constant 0 : i32
    return %c0_i32, %c0_i32_0 : i32, i32
  }
  func.func @transform_6(%arg0: i32) -> (i32, i32) {
    %c0_i32 = arith.constant 0 : i32
    %c0_i32_0 = arith.constant 0 : i32
    %c0_i32_1 = arith.constant 0 : i32
    return %c0_i32, %c0_i32_0 : i32, i32
  }
  func.func @transform_7(%arg0: i32) -> (i32, i32) {
    %c0_i32 = arith.constant 0 : i32
    %c0_i32_0 = arith.constant 0 : i32
    %c0_i32_1 = arith.constant 0 : i32
    return %c0_i32, %c0_i32_0 : i32, i32
  }
  func.func @transform_8(%arg0: i32) -> (i32, i32) {
    %c0_i32 = arith.constant 0 : i32
    %c0_i32_0 = arith.constant 0 : i32
    %c0_i32_1 = arith.constant 0 : i32
    return %c0_i32, %c0_i32_0 : i32, i32
  }
  func.func @transform_9(%arg0: i32) -> (i32, i32, i32) {
    %c0_i32 = arith.constant 0 : i32
    %c0_i32_0 = arith.constant 0 : i32
    %c0_i32_1 = arith.constant 0 : i32
    return %arg0, %c0_i32, %c0_i32_0 : i32, i32, i32
  }
}

</mosaic_0001>

<bundles_post_ra>
// kernel: tpu_custom_call.1
= control target key start
LH: loop header
LB: loop body
LE: loop exit
PB: predicated region body
PF: predicated region fallthrough
CT: control target
= control target key end

     0   :  { %14 = vsyncpa [#allocation3], 0  ;;  %s4853_s0 = inlined_call_operand.vmem [shape: f32[2,8,32], index: 0, kind: input, shape index: {}]   ;;  %s4854_s1 = inlined_call_operand.vmem [shape: bf16[8,32,4], index: 1, kind: input, shape index: {}]   ;;  %s4855_s2 = inlined_call_operand.vmem [shape: bf16[8,32,4], index: 2, kind: input, shape index: {}]   ;;  %s4856_s3 = inlined_call_operand.vmem [shape: bf16[8,32,4], index: 3, kind: input, shape index: {}]   ;;  %s4857_s4 = inlined_call_operand.vmem [shape: bf16[8,4,32], index: 4, kind: input, shape index: {}]   ;;  %s4858_s5 = inlined_call_operand.vmem [shape: bf16[32,128], index: 5, kind: input, shape index: {}]   ;;  %s4859_s6 = inlined_call_operand.vmem [shape: bf16[128,32], index: 6, kind: input, shape index: {}]   ;;  %s4860_s7 = inlined_call_operand.vmem [shape: f32[8,32], index: 7, kind: input, shape index: {}]   ;;  %s4861_s8 = inlined_call_operand.vmem [shape: f32[1,128], index: 8, kind: input, shape index: {}]   ;;  %s4862_s9 = inlined_call_operand.hbm [shape: f32[2,8,32], index: 9, kind: output, shape index: {}]  }
   0x1   :  { %16 = vsyncpa [#allocation3 + $0x1], 0  ;;  %s4159_s30 = smov 0   ;;  %s4161_s10 = smov 0  }
   0x2   :  { %s4163_s11 = smov 0   ;;  %s4165_s12 = smov 0  }
   0x3 LB: > { %s4180_s13 = sadd.s32 4294967295, %s4104_s12   ;;  %s3287_s14 = sadd.s32 4294967294, %s4104_s12   ;;  %s4104_s12 = sphi %s4165_s12, %s4868_s12   ;;  %s4100_s11 = sphi %s4163_s11, %s4867_s11   ;;  %s4096_s10 = sphi %s4161_s10, %s4866_s10   ;;  %s4092_s30 = sphi %s4159_s30, %s4865_s30  }
   0x4   : > { %s4184_s15 = sadd.s32 1, %s4104_s12   ;;  %s223_s16 = sadd.s32 1, %s4100_s11 }
   0x5   : > { %s220_s17 = ssub.s32 %s4104_s12, %s4184_s15  ;;  %p233_p0 = scmp.ne.s32.totalorder %s4100_s11, %s4096_s10 }
   0x6   : > { %p221_p1 = scmp.eq.s32.totalorder %s220_s17, 0  ;;  %p234_p2 = scmp.eq.s32.totalorder %s4180_s13, 1 }
   0x7   : > { %p239_p3 = scmp.ne.s32.totalorder %s4096_s10, %s4092_s30  ;;  %p240_p4 = scmp.eq.s32.totalorder %s3287_s14, 1 }
   0x8   : > { %s4195_s18 = scalar_select %p221_p1, %s4100_s11, %s223_s16  }
   0x9   : > { %p4197_p5 = por %p234_p2, %p233_p0  ;;  %p4201_p6 = por %p240_p4, %p239_p3 }
   0xa   : > { %p3290_p7 = scmp.ge.s32.totalorder %s4104_s12, 1  ;;  %p289_p8 = scmp.lt.s32.totalorder %s4104_s12, 3 }
   0xc   : > { %p290_p9 = pnand %p3290_p7, %p289_p8 }
   0xd   : > { %p324_p10 = scmp.lt.s32.totalorder (!%p290_p9), %s4180_s13, 1  ;;  %vm331_vm0 = vcmask (!%p290_p9), 261120   ;;  %v3942_v7 = vld [vmem:[%s4854_s1] sm:$0xff] (!%p290_p9)   ;;  %v3943_v8 = vld [vmem:[%s4854_s1 + $0x30] sm:$0xff] (!%p290_p9)   ;;  %v4106_v9 = vmov (!%p290_p9), 0.0   ;;  %v3944_v10 = vld [vmem:[%s4854_s1 + $0x8] sm:$0xff] (!%p290_p9)   ;;  %v346_v14 = vlaneseq (!%p290_p9) }
   0xe   : > { %293 = sbr.rel (%p290_p9) target bundleno = 2407 (0x967), region = 56  ;;  %3537 = vmatprep.subr.bf16.mxu0 (!%p290_p9), %v4106_v9  ;;  %3561 = vmatprep.subr.bf16.mxu1 (!%p290_p9), %v4106_v9  ;;  %v3945_v11 = vld [vmem:[%s4854_s1 + $0x38] sm:$0xff] (!%p290_p9)   ;;  %vm4107_vm1 = vmmov (!%p290_p9), 0   ;;  %v329_v18 = vld [vmem:[%s4860_s7] sm:$0xff] (!%p290_p9)  ;;  %v3946_v26 = vld [vmem:[%s4854_s1 + $0x10] sm:$0xff] (!%p290_p9)   ;;  %vm1720_vm2 = vcmask (!%p290_p9), 31744  }
   0xf   : > { %3538 = vmatpush3.bf16.msra.mxu0 (!%p290_p9), %v3942_v7  ;;  %3562 = vmatpush3.bf16.msra.mxu1 (!%p290_p9), %v3943_v8  ;;  %v4239_v16 = vshrl.u32 (!%p290_p9), %v346_v14, 7  ;;  %v3947_v27 = vld [vmem:[%s4854_s1 + $0x50] sm:$0xff] (!%p290_p9)   ;;  %v3948_v29 = vld [vmem:[%s4854_s1 + $0x18] sm:$0xff] (!%p290_p9)   ;;  %v3950_v31 = vld [vmem:[%s4854_s1 + $0x20] sm:$0xff] (!%p290_p9)   ;;  %vm2205_vm3 = vcmask (!%p290_p9), 1043456   ;;  %vm2097_vm4 = vcmask (!%p290_p9), 64512  }
  0x10   : > { %3539 = vmatprep.subr.bf16.mxu0 (!%p290_p9), %v4106_v9  ;;  %3563 = vmatprep.subr.bf16.mxu1 (!%p290_p9), %v4106_v9  ;;  %v3949_v30 = vld [vmem:[%s4854_s1 + $0x58] sm:$0xff] (!%p290_p9)   ;;  %v3951_v32 = vld [vmem:[%s4854_s1 + $0x70] sm:$0xff] (!%p290_p9)   ;;  %v3952_v33 = vld [vmem:[%s4854_s1 + $0x28] sm:$0xff] (!%p290_p9)   ;;  %vm2590_vm5 = vcmask (!%p290_p9), 1041408   ;;  %s321_s14 = sand.u32 (!%p290_p9), 1, %s4096_s10   ;;  %s3402_s17 = sshll.u32 (!%p290_p9), %s4180_s13, 7 }
  0x11   : > { %3541 = vmatprep.mubr.msk.bf16.mxu0 (!%p290_p9), %vm4107_vm1, %v4106_v9  ;;  %3565 = vmatprep.mubr.msk.bf16.mxu1 (!%p290_p9), %vm4107_vm1, %v4106_v9  ;;  %v348_v17 = vsub.s32 (!%p290_p9), 0, %v4239_v16  ;;  %v353_v19 = vsub.s32 (!%p290_p9), 1, %v4239_v16  ;;  %v3953_v34 = vld [vmem:[%s4854_s1 + $0x78] sm:$0xff] (!%p290_p9)   ;;  %v3954_v35 = vld [vmem:[%s4854_s1 + $0x40] sm:$0xff] (!%p290_p9)   ;;  %v3955_v36 = vld [vmem:[%s4855_s2 + $0x10] sm:$0xff] (!%p290_p9)   ;;  %s3291_s16 = sshll.u32 (!%p290_p9), %s321_s14, 3  ;;  %s4810_s24 = scalar_lea.hbm (!%p290_p9), %s4862_s9, %s3402_s17 }
  0x12   : > { %v3956_v37 = vld [vmem:[%s4854_s1 + $0x48] sm:$0xff] (!%p290_p9)   ;;  %v3957_v38 = vld [vmem:[%s4855_s2 + $0x18] sm:$0xff] (!%p290_p9)   ;;  %v3958_v39 = vld [vmem:[%s4854_s1 + $0x60] sm:$0xff] (!%p290_p9)   ;;  %s3215_s26 = scalar_lea.sflag (!%p290_p9), [#allocation3], %s321_s14  ;;  %s4108_s27 = smov (!%p290_p9), [#allocation2]  }
  0x13   : > { %3540 = vmatpush3.bf16.msra.mxu0 (!%p290_p9), %v3944_v10  ;;  %3564 = vmatpush3.bf16.msra.mxu1 (!%p290_p9), %v3945_v11  ;;  %v349_v20 = vrot.slane (!%p290_p9), %v329_v18, %v348_v17  ;;  %v354_v22 = vrot.slane (!%p290_p9), %v329_v18, %v353_v19  ;;  %v3959_v40 = vld [vmem:[%s4855_s2 + $0x30] sm:$0xff] (!%p290_p9)   ;;  %v3960_v41 = vld [vmem:[%s4854_s1 + $0x68] sm:$0xff] (!%p290_p9)   ;;  %v3961_v42 = vld [vmem:[%s4855_s2 + $0x38] sm:$0xff] (!%p290_p9)   ;;  %s4046_s28 = sshll.u32 (!%p290_p9), %s4108_s27, 4  ;;  %s4047_s28 = int_to_ptr.vmem [resolvable:$false] %s4046_s28 }
  0x14   : > { %3545 = vmatprep.subr.bf16.mxu0 (!%p290_p9), %v4106_v9  ;;  %3577 = vmatprep.subr.bf16.mxu1 (!%p290_p9), %v4106_v9  ;;  %v3962_v43 = vld [vmem:[%s4855_s2] sm:$0xff] (!%p290_p9)   ;;  %v3963_v44 = vld [vmem:[%s4855_s2 + $0x50] sm:$0xff] (!%p290_p9)   ;;  %v3964_v45 = vld [vmem:[%s4855_s2 + $0x8] sm:$0xff] (!%p290_p9)   ;;  %s4048_s29 = scalar_lea.vmem (!%p290_p9), %s4047_s28, 256 }
  0x15   : > { %s325_s21 = scalar_select %p324_p10, %s4180_s13, 1  ;;  %v3965_v46 = vld [vmem:[%s4855_s2 + $0x58] sm:$0xff]   ;;  %v3966_v47 = vld [vmem:[%s4855_s2 + $0x20] sm:$0xff]   ;;  %v3967_v48 = vld [vmem:[%s4855_s2 + $0x70] sm:$0xff]  }
  0x16   : > { %v3968_v49 = vld [vmem:[%s4855_s2 + $0x28] sm:$0xff]   ;;  %v3969_v50 = vld [vmem:[%s4855_s2 + $0x78] sm:$0xff]   ;;  %v3970_v51 = vld [vmem:[%s4855_s2 + $0x40] sm:$0xff]  }
  0x17   : > { %s3292_s22 = sshll.u32 %s325_s21, 3  ;;  %v3971_v52 = vld [vmem:[%s4856_s3 + $0x10] sm:$0xff]   ;;  %v3972_v53 = vld [vmem:[%s4855_s2 + $0x48] sm:$0xff]   ;;  %v3973_v54 = vld [vmem:[%s4856_s3 + $0x18] sm:$0xff]   ;;  %s323_s21 = scalar_lea.vmem [#allocation2], %s3291_s16 }
  0x18   : > { %s4212_s25 = scalar_lea.vmem %s4853_s0, %s3292_s22  ;;  %v3974_v55 = vld [vmem:[%s4855_s2 + $0x60] sm:$0xff]   ;;  %v3975_v56 = vld [vmem:[%s4856_s3 + $0x30] sm:$0xff]   ;;  %v3976_v57 = vld [vmem:[%s4855_s2 + $0x68] sm:$0xff]  }
  0x19   : > { %v330_v0 = vld [vmem:[%s4212_s25] sm:$0xff]  ;;  %v3977_v58 = vld [vmem:[%s4856_s3 + $0x38] sm:$0xff]   ;;  %v3979_v60 = vld [vmem:[%s4856_s3 + $0x50] sm:$0xff]  }
  0x1a   : > { %v332_v1 = vsel %vm331_vm0, %v330_v0, 0.0  ;;  %v3978_v59 = vld [vmem:[%s4856_s3] sm:$0xff]   ;;  %v3980_v61 = vld [vmem:[%s4856_s3 + $0x8] sm:$0xff]   ;;  %v3981_v62 = vld [vmem:[%s4856_s3 + $0x58] sm:$0xff]  }
  0x1b   : > { %333 = vadd.xlane.f32.xlu0 %v332_v1  ;;  %v3982_v63 = vld [vmem:[%s4856_s3 + $0x20] sm:$0xff]   ;;  %v3984_v1 = vld [vmem:[%s4856_s3 + $0x28] sm:$0xff]  }
  0xa8   : > { %v334_v2 = vpop.xlane.xlu0 %333 }
  0xa9   : > { %v336_v3 = vmul.f32 0.03125, %v334_v2  ;;  %v3985_v2 = vld [vmem:[%s4856_s3 + $0x78] sm:$0xff]  }
  0xab   : > { %v337_v4 = vsub.f32 %v330_v0, %v336_v3  ;;  %v3983_v0 = vld [vmem:[%s4856_s3 + $0x70] sm:$0xff]   ;;  %v3986_v3 = vld [vmem:[%s4856_s3 + $0x40] sm:$0xff]  }
  0xad   : > { %v338_v5 = vmul.f32 %v337_v4, %v337_v4 }
  0xaf   : > { %v339_v6 = vsel %vm331_vm0, %v338_v5, 0.0  ;;  %v3988_v5 = vld [vmem:[%s4856_s3 + $0x60] sm:$0xff]  }
  0xb0   : > { %340 = vadd.xlane.f32.xlu0 %v339_v6  ;;  %v3989_v6 = vld [vmem:[%s4856_s3 + $0x68] sm:$0xff]  }
 0x13d   : > { %v341_v12 = vpop.xlane.xlu0 %340 }
 0x13e   : > { %v342_v13 = vmul.f32 0.03125, %v341_v12 }
 0x140   : > { %v343_v15 = vadd.f32 1e-05, %v342_v13 }
 0x142   : > { %4000 = vrsqrt.f32 %v343_v15 }
 0x14c   : > { %v4001_v21 = vpop.eup %4000 }
 0x14d   : > { %v345_v23 = vmul.f32 %v4001_v21, %v337_v4  ;;  %v3987_v4 = vld [vmem:[%s4856_s3 + $0x48] sm:$0xff]  }
 0x14f   : > { %v350_v24 = vmul.f32 %v349_v20, %v345_v23 }
 0x151   : > { %v355_v25 = vadd.f32 %v354_v22, %v350_v24 }
 0x153   : > { %v4252_v28 = vpack.c.bf16 %v355_v25, %v355_v25 }
 0x155   : > { %3542 = vmatmul.mubr.msk.bf16.vlgmr.msra.gmra.mrb[0].mxu0 %vm331_vm0, %v4252_v28  ;;  %3566 = vmatmul.mubr.msk.bf16.vlgmr.msra.gmra.mrb[0].mxu1 %vm331_vm0, %v4252_v28 }
 0x156   : > { %3546 = vmatpush3.bf16.msra.mxu0 %v3946_v26  ;;  %3578 = vmatpush3.bf16.msra.mxu1 %v3947_v27 }
 0x157   : > { %3547 = vmatprep.subr.bf16.mxu0 %v4106_v9  ;;  %3579 = vmatprep.subr.bf16.mxu1 %v4106_v9 }
 0x158   : > { %3549 = vmatprep.mubr.msk.bf16.mxu0 %vm4107_vm1, %v4106_v9  ;;  %3581 = vmatprep.mubr.msk.bf16.mxu1 %vm4107_vm1, %v4106_v9 }
 0x15a   : > { %3548 = vmatpush3.bf16.msra.mxu0 %v3948_v29  ;;  %3580 = vmatpush3.bf16.msra.mxu1 %v3949_v30 }
 0x15b   : > { %3553 = vmatprep.subr.bf16.mxu0 %v4106_v9  ;;  %3593 = vmatprep.subr.bf16.mxu1 %v4106_v9 }
 0x15d   : > { %3550 = vmatmul.mubr.msk.bf16.vlgmr.msra.gmra.mrb[4].mxu0 %vm331_vm0, %v4252_v28  ;;  %3582 = vmatmul.mubr.msk.bf16.vlgmr.msra.gmra.mrb[4].mxu1 %vm331_vm0, %v4252_v28 }
 0x15e   : > { %3554 = vmatpush3.bf16.msra.mxu0 %v3950_v31  ;;  %3594 = vmatpush3.bf16.msra.mxu1 %v3951_v32 }
 0x15f   : > { %3555 = vmatprep.subr.bf16.mxu0 %v4106_v9  ;;  %3595 = vmatprep.subr.bf16.mxu1 %v4106_v9 }
 0x160   : > { %3557 = vmatprep.mubr.msk.bf16.mxu0 %vm4107_vm1, %v4106_v9  ;;  %3597 = vmatprep.mubr.msk.bf16.mxu1 %vm4107_vm1, %v4106_v9 }
 0x162   : > { %3556 = vmatpush3.bf16.msra.mxu0 %v3952_v33  ;;  %3596 = vmatpush3.bf16.msra.mxu1 %v3953_v34 }
 0x163   : > { %3569 = vmatprep.subr.bf16.mxu0 %v4106_v9  ;;  %3609 = vmatprep.subr.bf16.mxu1 %v4106_v9 }
 0x165   : > { %3558 = vmatmul.mubr.msk.bf16.vlgmr.msra.gmra.mrb[8].mxu0 %vm331_vm0, %v4252_v28  ;;  %3598 = vmatmul.mubr.msk.bf16.vlgmr.msra.gmra.mrb[8].mxu1 %vm331_vm0, %v4252_v28 }
 0x166   : > { %3570 = vmatpush3.bf16.msra.mxu0 %v3954_v35  ;;  %3610 = vmatpush3.bf16.msra.mxu1 %v3955_v36 }
 0x167   : > { %3571 = vmatprep.subr.bf16.mxu0 %v4106_v9  ;;  %3611 = vmatprep.subr.bf16.mxu1 %v4106_v9 }
 0x168   : > { %3573 = vmatprep.mubr.msk.bf16.mxu0 %vm4107_vm1, %v4106_v9  ;;  %3613 = vmatprep.mubr.msk.bf16.mxu1 %vm4107_vm1, %v4106_v9 }
 0x16a   : > { %3572 = vmatpush3.bf16.msra.mxu0 %v3956_v37  ;;  %3612 = vmatpush3.bf16.msra.mxu1 %v3957_v38 }
 0x16b   : > { %3585 = vmatprep.subr.bf16.mxu0 %v4106_v9  ;;  %3625 = vmatprep.subr.bf16.mxu1 %v4106_v9 }
 0x16d   : > { %3574 = vmatmul.mubr.msk.bf16.vlgmr.msra.gmra.mrb[12].mxu0 %vm331_vm0, %v4252_v28  ;;  %3614 = vmatmul.mubr.msk.bf16.vlgmr.msra.gmra.mrb[12].mxu1 %vm331_vm0, %v4252_v28 }
 0x16e   : > { %3586 = vmatpush3.bf16.msra.mxu0 %v3958_v39  ;;  %3626 = vmatpush3.bf16.msra.mxu1 %v3959_v40 }
 0x16f   : > { %3587 = vmatprep.subr.bf16.mxu0 %v4106_v9  ;;  %3627 = vmatprep.subr.bf16.mxu1 %v4106_v9 }
 0x170   : > { %3589 = vmatprep.mubr.msk.bf16.mxu0 %vm4107_vm1, %v4106_v9  ;;  %3629 = vmatprep.mubr.msk.bf16.mxu1 %vm4107_vm1, %v4106_v9 }
 0x172   : > { %3588 = vmatpush3.bf16.msra.mxu0 %v3960_v41  ;;  %3628 = vmatpush3.bf16.msra.mxu1 %v3961_v42 }
 0x173   : > { %3601 = vmatprep.subr.bf16.mxu0 %v4106_v9  ;;  %3641 = vmatprep.subr.bf16.mxu1 %v4106_v9 }
 0x175   : > { %3590 = vmatmul.mubr.msk.bf16.vlgmr.msra.gmra.mrb[16].mxu0 %vm331_vm0, %v4252_v28  ;;  %3630 = vmatmul.mubr.msk.bf16.vlgmr.msra.gmra.mrb[16].mxu1 %vm331_vm0, %v4252_v28 }
 0x176   : > { %3602 = vmatpush3.bf16.msra.mxu0 %v3962_v43  ;;  %3642 = vmatpush3.bf16.msra.mxu1 %v3963_v44 }
 0x177   : > { %3603 = vmatprep.subr.bf16.mxu0 %v4106_v9  ;;  %3643 = vmatprep.subr.bf16.mxu1 %v4106_v9 }
 0x178   : > { %3605 = vmatprep.mubr.msk.bf16.mxu0 %vm4107_vm1, %v4106_v9  ;;  %3645 = vmatprep.mubr.msk.bf16.mxu1 %vm4107_vm1, %v4106_v9 }
 0x17a   : > { %3604 = vmatpush3.bf16.msra.mxu0 %v3964_v45  ;;  %3644 = vmatpush3.bf16.msra.mxu1 %v3965_v46 }
 0x17b   : > { %3617 = vmatprep.subr.bf16.mxu0 %v4106_v9  ;;  %3657 = vmatprep.subr.bf16.mxu1 %v4106_v9 }
 0x17d   : > { %3606 = vmatmul.mubr.msk.bf16.vlgmr.msra.gmra.mrb[20].mxu0 %vm331_vm0, %v4252_v28  ;;  %3646 = vmatmul.mubr.msk.bf16.vlgmr.msra.gmra.mrb[20].mxu1 %vm331_vm0, %v4252_v28 }
 0x17e   : > { %3618 = vmatpush3.bf16.msra.mxu0 %v3966_v47  ;;  %3658 = vmatpush3.bf16.msra.mxu1 %v3967_v48 }
 0x17f   : > { %3619 = vmatprep.subr.bf16.mxu0 %v4106_v9  ;;  %3659 = vmatprep.subr.bf16.mxu1 %v4106_v9 }
 0x180   : > { %3621 = vmatprep.mubr.msk.bf16.mxu0 %vm4107_vm1, %v4106_v9  ;;  %3661 = vmatprep.mubr.msk.bf16.mxu1 %vm4107_vm1, %v4106_v9 }
 0x182   : > { %3620 = vmatpush3.bf16.msra.mxu0 %v3968_v49  ;;  %3660 = vmatpush3.bf16.msra.mxu1 %v3969_v50 }
 0x183   : > { %3633 = vmatprep.subr.bf16.mxu0 %v4106_v9  ;;  %3673 = vmatprep.subr.bf16.mxu1 %v4106_v9 }
 0x185   : > { %3622 = vmatmul.mubr.msk.bf16.vlgmr.msra.gmra.mrb[24].mxu0 %vm331_vm0, %v4252_v28  ;;  %3662 = vmatmul.mubr.msk.bf16.vlgmr.msra.gmra.mrb[24].mxu1 %vm331_vm0, %v4252_v28 }
 0x186   : > { %3634 = vmatpush3.bf16.msra.mxu0 %v3970_v51  ;;  %3674 = vmatpush3.bf16.msra.mxu1 %v3971_v52 }
 0x187   : > { %3635 = vmatprep.subr.bf16.mxu0 %v4106_v9  ;;  %3675 = vmatprep.subr.bf16.mxu1 %v4106_v9 }
 0x188   : > { %3637 = vmatprep.mubr.msk.bf16.mxu0 %vm4107_vm1, %v4106_v9  ;;  %3677 = vmatprep.mubr.msk.bf16.mxu1 %vm4107_vm1, %v4106_v9 }
 0x18a   : > { %3636 = vmatpush3.bf16.msra.mxu0 %v3972_v53  ;;  %3676 = vmatpush3.bf16.msra.mxu1 %v3973_v54 }
 0x18b   : > { %3649 = vmatprep.subr.bf16.mxu0 %v4106_v9  ;;  %3689 = vmatprep.subr.bf16.mxu1 %v4106_v9 }
 0x18d   : > { %3638 = vmatmul.mubr.msk.bf16.vlgmr.msra.gmra.mrb[28].mxu0 %vm331_vm0, %v4252_v28  ;;  %3678 = vmatmul.mubr.msk.bf16.vlgmr.msra.gmra.mrb[28].mxu1 %vm331_vm0, %v4252_v28 }
 0x18e   : > { %3650 = vmatpush3.bf16.msra.mxu0 %v3974_v55  ;;  %3690 = vmatpush3.bf16.msra.mxu1 %v3975_v56 }
 0x18f   : > { %3651 = vmatprep.subr.bf16.mxu0 %v4106_v9  ;;  %3691 = vmatprep.subr.bf16.mxu1 %v4106_v9 }
 0x190   : > { %3653 = vmatprep.mubr.msk.bf16.mxu0 %vm4107_vm1, %v4106_v9  ;;  %3693 = vmatprep.mubr.msk.bf16.mxu1 %vm4107_vm1, %v4106_v9 }
 0x192   : > { %3652 = vmatpush3.bf16.msra.mxu0 %v3976_v57  ;;  %3692 = vmatpush3.bf16.msra.mxu1 %v3977_v58 }
 0x193   : > { %3665 = vmatprep.subr.bf16.mxu0 %v4106_v9  ;;  %3705 = vmatprep.subr.bf16.mxu1 %v4106_v9 }
 0x195   : > { %3654 = vmatmul.mubr.msk.bf16.vlgmr.msra.gmra.mrb[32].mxu0 %vm331_vm0, %v4252_v28  ;;  %3694 = vmatmul.mubr.msk.bf16.vlgmr.msra.gmra.mrb[32].mxu1 %vm331_vm0, %v4252_v28 }
 0x196   : > { %3666 = vmatpush3.bf16.msra.mxu0 %v3978_v59  ;;  %3706 = vmatpush3.bf16.msra.mxu1 %v3979_v60 }
 0x197   : > { %3667 = vmatprep.subr.bf16.mxu0 %v4106_v9  ;;  %3707 = vmatprep.subr.bf16.mxu1 %v4106_v9 }
 0x198   : > { %3669 = vmatprep.mubr.msk.bf16.mxu0 %vm4107_vm1, %v4106_v9  ;;  %3709 = vmatprep.mubr.msk.bf16.mxu1 %vm4107_vm1, %v4106_v9 }
 0x19a   : > { %3668 = vmatpush3.bf16.msra.mxu0 %v3980_v61  ;;  %3708 = vmatpush3.bf16.msra.mxu1 %v3981_v62 }
 0x19b   : > { %3681 = vmatprep.subr.bf16.mxu0 %v4106_v9  ;;  %3721 = vmatprep.subr.bf16.mxu1 %v4106_v9 }
 0x19d   : > { %3670 = vmatmul.mubr.msk.bf16.vlgmr.msra.gmra.mrb[36].mxu0 %vm331_vm0, %v4252_v28  ;;  %3710 = vmatmul.mubr.msk.bf16.vlgmr.msra.gmra.mrb[36].mxu1 %vm331_vm0, %v4252_v28 }
 0x19e   : > { %3682 = vmatpush3.bf16.msra.mxu0 %v3982_v63  ;;  %3722 = vmatpush3.bf16.msra.mxu1 %v3983_v0 }
 0x19f   : > { %3683 = vmatprep.subr.bf16.mxu0 %v4106_v9  ;;  %3723 = vmatprep.subr.bf16.mxu1 %v4106_v9 }
 0x1a0   : > { %3685 = vmatprep.mubr.msk.bf16.mxu0 %vm4107_vm1, %v4106_v9  ;;  %3725 = vmatprep.mubr.msk.bf16.mxu1 %vm4107_vm1, %v4106_v9 }
 0x1a2   : > { %3684 = vmatpush3.bf16.msra.mxu0 %v3984_v1  ;;  %3724 = vmatpush3.bf16.msra.mxu1 %v3985_v2 }
 0x1a3   : > { %3697 = vmatprep.subr.bf16.mxu0 %v4106_v9  ;;  %3735 = vmatprep.subr.bf16.mxu1 %v4106_v9 }
 0x1a5   : > { %3686 = vmatmul.mubr.msk.bf16.vlgmr.msra.gmra.mrb[40].mxu0 %vm331_vm0, %v4252_v28  ;;  %3726 = vmatmul.mubr.msk.bf16.vlgmr.msra.gmra.mrb[40].mxu1 %vm331_vm0, %v4252_v28 }
 0x1a6   : > { %3698 = vmatpush3.bf16.msra.mxu0 %v3986_v3  ;;  %3701 = vmatprep.mubr.msk.bf16.mxu0 %vm4107_vm1, %v4106_v9 }
 0x1a7   : > { %3699 = vmatprep.subr.bf16.mxu0 %v4106_v9  ;;  %3737 = vmatprep.mubr.msk.bf16.mxu1 %vm4107_vm1, %v4106_v9 }
 0x1aa   : > { %3700 = vmatpush3.bf16.msra.mxu0 %v3987_v4 }
 0x1ab   : > { %3713 = vmatprep.subr.bf16.mxu0 %v4106_v9 }
 0x1ad   : > { %3702 = vmatmul.mubr.msk.bf16.vlgmr.msra.gmra.mrb[44].mxu0 %vm331_vm0, %v4252_v28 }
 0x1ae   : > { %3714 = vmatpush3.bf16.msra.mxu0 %v3988_v5  ;;  %3717 = vmatprep.mubr.msk.bf16.mxu0 %vm4107_vm1, %v4106_v9 }
 0x1af   : > { %3715 = vmatprep.subr.bf16.mxu0 %v4106_v9 }
 0x1b2   : > { %3716 = vmatpush3.bf16.msra.mxu0 %v3989_v6 }
 0x1b3   : > { %3729 = vmatprep.subr.bf16.mxu0 %v4106_v9 }
 0x1b5   : > { %3718 = vmatmul.mubr.msk.bf16.vlgmr.msra.gmra.mrb[48].mxu0 %vm331_vm0, %v4252_v28 }
 0x1b6   : > { %3731 = vmatprep.mubr.msk.bf16.mxu0 %vm4107_vm1, %v4106_v9 }
 0x228   : > { %v4520_v7 = vpop.f32.mrb[0].mxu0  ;;  %v4522_v8 = vpop.f32.mrb[0].mxu1 }
 0x229   : > { %v3543_v10 = vpop.f32.mrb[1].mxu0  ;;  %v3567_v11 = vpop.f32.mrb[1].mxu1  ;;  %v1707_v56 = vpack.c.bf16 %v4522_v8, %v4522_v8  ;;  %v1704_v5 = vpack.c.bf16 %v4520_v7, %v4520_v7 }
 0x22a   : > { %v441_v12 = vpop.f32.mrb[2].mxu0  ;;  %v597_v13 = vpop.f32.mrb[2].mxu1 }
 0x22b   : > { %v3544_v14 = vpop.f32.mrb[3].mxu0  ;;  %v3568_v15 = vpop.f32.mrb[3].mxu1 }
 0x230   : > { %v490_v17 = vpop.f32.mrb[4].mxu0  ;;  %v4524_v18 = vpop.f32.mrb[4].mxu1 }
 0x231   : > { %v3551_v19 = vpop.f32.mrb[5].mxu0  ;;  %v3583_v20 = vpop.f32.mrb[5].mxu1  ;;  %v1705_v45 = vpack.c.bf16 %v490_v17, %v490_v17  ;;  %v1709_v6 = vpack.c.bf16 %v4524_v18, %v4524_v18 }
 0x232   : > { %v493_v21 = vpop.f32.mrb[6].mxu0  ;;  %v701_v22 = vpop.f32.mrb[6].mxu1 }
 0x233   : > { %v3552_v23 = vpop.f32.mrb[7].mxu0  ;;  %v3584_v24 = vpop.f32.mrb[7].mxu1 }
 0x238   : > { %v4526_v25 = vpop.f32.mrb[8].mxu0  ;;  %v4528_v26 = vpop.f32.mrb[8].mxu1 }
 0x239   : > { %v3559_v27 = vpop.f32.mrb[9].mxu0  ;;  %v3599_v28 = vpop.f32.mrb[9].mxu1  ;;  %v1706_v21 = vpack.c.bf16 %v4526_v25, %v4526_v25  ;;  %v1711_v22 = vpack.c.bf16 %v4528_v26, %v4528_v26 }
 0x23a   : > { %v545_v29 = vpop.f32.mrb[10].mxu0  ;;  %v805_v30 = vpop.f32.mrb[10].mxu1 }
 0x23b   : > { %v3560_v31 = vpop.f32.mrb[11].mxu0  ;;  %v3600_v32 = vpop.f32.mrb[11].mxu1 }
 0x240   : > { %v4530_v33 = vpop.f32.mrb[12].mxu0  ;;  %v938_v34 = vpop.f32.mrb[12].mxu1 }
 0x241   : > { %v1713_v35 = vpack.c.bf16 %v938_v34, %v938_v34  ;;  %v3575_v36 = vpop.f32.mrb[13].mxu0  ;;  %v3615_v37 = vpop.f32.mrb[13].mxu1 }
 0x242   : > { %v649_v38 = vpop.f32.mrb[14].mxu0  ;;  %v941_v39 = vpop.f32.mrb[14].mxu1  ;;  %v1708_v36 = vpack.c.bf16 %v4530_v33, %v4530_v33 }
 0x243   : > { %v1771_v40 = vsel %vm1720_vm2, %v1713_v35, 0  ;;  %v3576_v41 = vpop.f32.mrb[15].mxu0  ;;  %v3616_v42 = vpop.f32.mrb[15].mxu1 }
 0x244   : > { %3736 = vmatpush3.bf16.xpose.msra.mxu1 %v1771_v40 }
 0x245   : > { %3747 = vmatprep.subr.bf16.mxu1 %v4106_v9 }
 0x248   : > { %v4534_v43 = vpop.f32.mrb[16].mxu0  ;;  %v1042_v44 = vpop.f32.mrb[16].mxu1 }
 0x249   : > { %v1715_v46 = vpack.c.bf16 %v1042_v44, %v1042_v44  ;;  %v3591_v47 = vpop.f32.mrb[17].mxu0  ;;  %v3631_v48 = vpop.f32.mrb[17].mxu1 }
 0x24a   : > { %v753_v49 = vpop.f32.mrb[18].mxu0  ;;  %v1045_v50 = vpop.f32.mrb[18].mxu1 }
 0x24b   : > { %v1863_v51 = vsel %vm1720_vm2, %v1715_v46, 0  ;;  %v3592_v52 = vpop.f32.mrb[19].mxu0  ;;  %v3632_v53 = vpop.f32.mrb[19].mxu1  ;;  %3738 = vmatmul.mubr.msk.bf16.vlgmr.msra.gmra.mrb[44].mxu1 %vm1720_vm2, %v1705_v45  ;;  %v1710_v49 = vpack.c.bf16 %v4534_v43, %v4534_v43 }
 0x24c   : > { %3748 = vmatpush3.bf16.xpose.msra.mxu1 %v1863_v51  ;;  %3749 = vmatprep.mubr.msk.bf16.mxu1 %vm4107_vm1, %v4106_v9 }
 0x24d   : > { %3759 = vmatprep.subr.bf16.mxu1 %v4106_v9 }
 0x250   : > { %v886_v54 = vpop.f32.mrb[20].mxu0  ;;  %v1146_v55 = vpop.f32.mrb[20].mxu1 }
 0x251   : > { %v1712_v57 = vpack.c.bf16 %v886_v54, %v886_v54  ;;  %v1717_v58 = vpack.c.bf16 %v1146_v55, %v1146_v55  ;;  %v3607_v59 = vpop.f32.mrb[21].mxu0  ;;  %v3647_v60 = vpop.f32.mrb[21].mxu1 }
 0x252   : > { %v889_v61 = vpop.f32.mrb[22].mxu0  ;;  %v1149_v62 = vpop.f32.mrb[22].mxu1 }
 0x253   : > { %v1725_v63 = vsel %vm1720_vm2, %v1712_v57, 0  ;;  %v1955_v0 = vsel %vm1720_vm2, %v1717_v58, 0  ;;  %v3608_v1 = vpop.f32.mrb[23].mxu0  ;;  %v3648_v2 = vpop.f32.mrb[23].mxu1  ;;  %3750 = vmatmul.mubr.msk.bf16.vlgmr.msra.gmra.mrb[48].mxu1 %vm1720_vm2, %v1707_v56 }
 0x254   : > { %3730 = vmatpush3.bf16.xpose.msra.mxu0 %v1725_v63  ;;  %3760 = vmatpush3.bf16.xpose.msra.mxu1 %v1955_v0 }
 0x255   : > { %3761 = vmatprep.mubr.msk.bf16.mxu1 %vm4107_vm1, %v4106_v9  ;;  %3741 = vmatprep.subr.bf16.mxu0 %v4106_v9 }
 0x256   : > { %3771 = vmatprep.subr.bf16.mxu1 %v4106_v9 }
 0x258   : > { %v990_v3 = vpop.f32.mrb[24].mxu0  ;;  %v1250_v4 = vpop.f32.mrb[24].mxu1 }
 0x259   : > { %v1714_v8 = vpack.c.bf16 %v990_v3, %v990_v3  ;;  %v1719_v10 = vpack.c.bf16 %v1250_v4, %v1250_v4  ;;  %v3623_v11 = vpop.f32.mrb[25].mxu0  ;;  %v3663_v12 = vpop.f32.mrb[25].mxu1 }
 0x25a   : > { %v993_v13 = vpop.f32.mrb[26].mxu0  ;;  %v1253_v14 = vpop.f32.mrb[26].mxu1 }
 0x25b   : > { %v1817_v15 = vsel %vm1720_vm2, %v1714_v8, 0  ;;  %v2047_v17 = vsel %vm1720_vm2, %v1719_v10, 0  ;;  %v3624_v19 = vpop.f32.mrb[27].mxu0  ;;  %v3664_v20 = vpop.f32.mrb[27].mxu1  ;;  %3732 = vmatmul.mubr.msk.bf16.vlgmr.msra.gmra.mrb[52].mxu0 %vm1720_vm2, %v1704_v5  ;;  %3762 = vmatmul.mubr.msk.bf16.vlgmr.msra.gmra.mrb[52].mxu1 %vm1720_vm2, %v1709_v6 }
 0x25c   : > { %3742 = vmatpush3.bf16.xpose.msra.mxu0 %v1817_v15  ;;  %3772 = vmatpush3.bf16.xpose.msra.mxu1 %v2047_v17 }
 0x25d   : > { %3743 = vmatprep.mubr.msk.bf16.mxu0 %vm4107_vm1, %v4106_v9  ;;  %3773 = vmatprep.mubr.msk.bf16.mxu1 %vm4107_vm1, %v4106_v9 }
 0x25e   : > { %3753 = vmatprep.subr.bf16.mxu0 %v4106_v9  ;;  %3783 = vmatprep.subr.bf16.mxu1 %v4106_v9 }
 0x260   : > { %v1094_v7 = vpop.f32.mrb[28].mxu0  ;;  %v1386_v18 = vpop.f32.mrb[28].mxu1 }
 0x261   : > { %v1716_v23 = vpack.c.bf16 %v1094_v7, %v1094_v7  ;;  %v2195_v24 = vpack.c.bf16 %v1386_v18, %v1386_v18  ;;  %v3639_v27 = vpop.f32.mrb[29].mxu0  ;;  %v3679_v28 = vpop.f32.mrb[29].mxu1 }
 0x262   : > { %v1097_v29 = vpop.f32.mrb[30].mxu0  ;;  %v1389_v30 = vpop.f32.mrb[30].mxu1 }
 0x263   : > { %v1909_v31 = vsel %vm1720_vm2, %v1716_v23, 0  ;;  %v2253_v32 = vsel %vm2205_vm3, %v2195_v24, 0  ;;  %v3640_v34 = vpop.f32.mrb[31].mxu0  ;;  %v3680_v35 = vpop.f32.mrb[31].mxu1  ;;  %3744 = vmatmul.mubr.msk.bf16.vlgmr.msra.gmra.mrb[56].mxu0 %vm1720_vm2, %v1706_v21  ;;  %3774 = vmatmul.mubr.msk.bf16.vlgmr.msra.gmra.mrb[56].mxu1 %vm1720_vm2, %v1711_v22 }
 0x264   : > { %3754 = vmatpush3.bf16.xpose.msra.mxu0 %v1909_v31  ;;  %3784 = vmatpush3.bf16.msra.mxu1 %v2253_v32 }
 0x265   : > { %3755 = vmatprep.mubr.msk.bf16.mxu0 %vm4107_vm1, %v4106_v9  ;;  %3765 = vmatprep.subr.bf16.mxu0 %v4106_v9 }
 0x266   : > { %3785 = vmatprep.mubr.msk.bf16.mxu1 %vm4107_vm1, %v4106_v9  ;;  %3795 = vmatprep.subr.bf16.mxu1 %v4106_v9 }
 0x268   : > { %v1198_v25 = vpop.f32.mrb[32].mxu0  ;;  %v1490_v26 = vpop.f32.mrb[32].mxu1 }
 0x269   : > { %v1718_v37 = vpack.c.bf16 %v1198_v25, %v1198_v25  ;;  %v2197_v38 = vpack.c.bf16 %v1490_v26, %v1490_v26  ;;  %v3655_v39 = vpop.f32.mrb[33].mxu0  ;;  %v3695_v40 = vpop.f32.mrb[33].mxu1 }
 0x26a   : > { %v1201_v41 = vpop.f32.mrb[34].mxu0  ;;  %v1493_v42 = vpop.f32.mrb[34].mxu1 }
 0x26b   : > { %v2001_v44 = vsel %vm1720_vm2, %v1718_v37, 0  ;;  %v4582_v45 = vsel %vm2205_vm3, %v2197_v38, 0  ;;  %v3656_v46 = vpop.f32.mrb[35].mxu0  ;;  %v3696_v47 = vpop.f32.mrb[35].mxu1  ;;  %3756 = vmatmul.mubr.msk.bf16.vlgmr.msra.gmra.mrb[60].mxu0 %vm1720_vm2, %v1708_v36 }
 0x26c   : > { %3766 = vmatpush3.bf16.xpose.msra.mxu0 %v2001_v44  ;;  %3767 = vmatprep.mubr.msk.bf16.mxu0 %vm4107_vm1, %v4106_v9 }
 0x26d   : > { %3777 = vmatprep.subr.bf16.mxu0 %v4106_v9 }
 0x270   : > { %v1334_v33 = vpop.f32.mrb[36].mxu0  ;;  %v1594_v48 = vpop.f32.mrb[36].mxu1 }
 0x271   : > { %v2194_v50 = vpack.c.bf16 %v1334_v33, %v1334_v33  ;;  %v2199_v51 = vpack.c.bf16 %v1594_v48, %v1594_v48  ;;  %v3671_v52 = vpop.f32.mrb[37].mxu0  ;;  %v3711_v53 = vpop.f32.mrb[37].mxu1 }
 0x272   : > { %v1337_v54 = vpop.f32.mrb[38].mxu0  ;;  %v1597_v55 = vpop.f32.mrb[38].mxu1 }
 0x273   : > { %v2207_v56 = vsel %vm2205_vm3, %v2194_v50, 0  ;;  %v4592_v57 = vsel %vm2205_vm3, %v2199_v51, 0  ;;  %v3672_v58 = vpop.f32.mrb[39].mxu0  ;;  %v3712_v59 = vpop.f32.mrb[39].mxu1  ;;  %3768 = vmatmul.mubr.msk.bf16.vlgmr.msra.gmra.mrb[64].mxu0 %vm1720_vm2, %v1710_v49 }
 0x274   : > { %3778 = vmatpush3.bf16.msra.mxu0 %v2207_v56  ;;  %3779 = vmatprep.mubr.msk.bf16.mxu0 %vm4107_vm1, %v4106_v9 }
 0x275   : > { %3789 = vmatprep.subr.bf16.mxu0 %v4106_v9 }
 0x278   : > { %v1438_v43 = vpop.f32.mrb[40].mxu0  ;;  %v1698_v60 = vpop.f32.mrb[40].mxu1 }
 0x279   : > { %v2196_v61 = vpack.c.bf16 %v1438_v43, %v1438_v43  ;;  %v2201_v62 = vpack.c.bf16 %v1698_v60, %v1698_v60  ;;  %v3687_v63 = vpop.f32.mrb[41].mxu0  ;;  %v3727_v0 = vpop.f32.mrb[41].mxu1 }
 0x27a   : > { %v1441_v1 = vpop.f32.mrb[42].mxu0  ;;  %v1701_v2 = vpop.f32.mrb[42].mxu1 }
 0x27b   : > { %v4599_v3 = vsel %vm2205_vm3, %v2196_v61, 0  ;;  %v4602_v4 = vsel %vm2205_vm3, %v2201_v62, 0  ;;  %v3688_v5 = vpop.f32.mrb[43].mxu0  ;;  %v3728_v6 = vpop.f32.mrb[43].mxu1 }
 0x280   : > { %v1542_v8 = vpop.f32.mrb[44].mxu0 }
 0x281   : > { %v2198_v10 = vpack.c.bf16 %v1542_v8, %v1542_v8  ;;  %v3703_v11 = vpop.f32.mrb[45].mxu0 }
 0x282   : > { %v1545_v12 = vpop.f32.mrb[46].mxu0 }
 0x283   : > { %v4605_v13 = vsel %vm2205_vm3, %v2198_v10, 0  ;;  %v3704_v14 = vpop.f32.mrb[47].mxu0 }
 0x288   : > { %v1646_v15 = vpop.f32.mrb[48].mxu0 }
 0x289   : > { %v2200_v17 = vpack.c.bf16 %v1646_v15, %v1646_v15  ;;  %v3719_v19 = vpop.f32.mrb[49].mxu0 }
 0x28a   : > { %v1649_v20 = vpop.f32.mrb[50].mxu0 }
 0x28b   : > { %v4608_v7 = vsel %vm2205_vm3, %v2200_v17, 0  ;;  %v3720_v18 = vpop.f32.mrb[51].mxu0 }
 0x31e   : > { %v1807_v21 = vpop.f32.mrb[44].mxu1 }
 0x31f   : > { %v3739_v22 = vpop.f32.mrb[45].mxu1  ;;  %v2090_v37 = vmul.f32 0.5, %v1807_v21 }
 0x320   : > { %v1810_v23 = vpop.f32.mrb[46].mxu1 }
 0x321   : > { %v3740_v24 = vpop.f32.mrb[47].mxu1  ;;  %v2101_v42 = vsel %vm2097_vm4, %v2090_v37, -inf }
 0x326   : > { %v1899_v27 = vpop.f32.mrb[48].mxu1 }
 0x327   : > { %v3751_v28 = vpop.f32.mrb[49].mxu1  ;;  %v2092_v41 = vmul.f32 0.5, %v1899_v27 }
 0x328   : > { %v1902_v29 = vpop.f32.mrb[50].mxu1 }
 0x329   : > { %v3752_v30 = vpop.f32.mrb[51].mxu1  ;;  %v2107_v54 = vsel %vm2097_vm4, %v2092_v41, -inf }
 0x32e   : > { %v1761_v31 = vpop.f32.mrb[52].mxu0  ;;  %v1991_v32 = vpop.f32.mrb[52].mxu1 }
 0x32f   : > { %v2089_v34 = vmul.f32 0.5, %v1761_v31  ;;  %v3733_v35 = vpop.f32.mrb[53].mxu0  ;;  %v3763_v25 = vpop.f32.mrb[53].mxu1  ;;  %v2094_v51 = vmul.f32 0.5, %v1991_v32 }
 0x330   : > { %v1764_v26 = vpop.f32.mrb[54].mxu0  ;;  %v1994_v36 = vpop.f32.mrb[54].mxu1 }
 0x331   : > { %v3734_v38 = vpop.f32.mrb[55].mxu0  ;;  %v3764_v39 = vpop.f32.mrb[55].mxu1  ;;  %v2098_v40 = vsel %vm2097_vm4, %v2089_v34, -inf  ;;  %v2113_v58 = vsel %vm2097_vm4, %v2094_v51, -inf }
 0x332   : > { %2099 = vmax.xlane.f32.xlu1 %v2098_v40 }
 0x336   : > { %v2083_v44 = vpop.f32.mrb[56].mxu1  ;;  %2102 = vmax.xlane.f32.xlu1 %v2101_v42  ;;  %v1853_v46 = vpop.f32.mrb[56].mxu0 }
 0x337   : > { %v2091_v47 = vmul.f32 0.5, %v1853_v46  ;;  %v3745_v33 = vpop.f32.mrb[57].mxu0  ;;  %v3775_v48 = vpop.f32.mrb[57].mxu1  ;;  %v2096_v56 = vmul.f32 0.5, %v2083_v44 }
 0x338   : > { %v1856_v49 = vpop.f32.mrb[58].mxu0  ;;  %v2086_v50 = vpop.f32.mrb[58].mxu1 }
 0x339   : > { %v3746_v52 = vpop.f32.mrb[59].mxu0  ;;  %v3776_v53 = vpop.f32.mrb[59].mxu1  ;;  %v2104_v55 = vsel %vm2097_vm4, %v2091_v47, -inf  ;;  %v2119_v63 = vsel %vm2097_vm4, %v2096_v56, -inf }
 0x33a   : > { %2108 = vmax.xlane.f32.xlu1 %v2107_v54  ;;  %2105 = vmax.xlane.f32.xlu0 %v2104_v55 }
 0x33e   : > { %2114 = vmax.xlane.f32.xlu1 %v2113_v58  ;;  %v1945_v59 = vpop.f32.mrb[60].mxu0 }
 0x33f   : > { %v2093_v43 = vmul.f32 0.5, %v1945_v59  ;;  %v3757_v60 = vpop.f32.mrb[61].mxu0 }
 0x340   : > { %v1948_v61 = vpop.f32.mrb[62].mxu0 }
 0x341   : > { %v3758_v62 = vpop.f32.mrb[63].mxu0  ;;  %v2110_v0 = vsel %vm2097_vm4, %v2093_v43, -inf }
 0x342   : > { %2120 = vmax.xlane.f32.xlu1 %v2119_v63  ;;  %2111 = vmax.xlane.f32.xlu0 %v2110_v0 }
 0x346   : > { %v2037_v1 = vpop.f32.mrb[64].mxu0 }
 0x347   : > { %v2095_v2 = vmul.f32 0.5, %v2037_v1  ;;  %v3769_v5 = vpop.f32.mrb[65].mxu0 }
 0x348   : > { %v2040_v6 = vpop.f32.mrb[66].mxu0 }
 0x349   : > { %v3770_v8 = vpop.f32.mrb[67].mxu0  ;;  %v2116_v10 = vsel %vm2097_vm4, %v2095_v2, -inf }
 0x34a   : > { %2117 = vmax.xlane.f32.xlu0 %v2116_v10 }
 0x3bf   : > { %v2100_v11 = vpop.xlane.xlu1 %2099 }
 0x3c0   : > { %v2122_v12 = vsub.f32 %v2089_v34, %v2100_v11 }
 0x3c2   : > { %v2130_v14 = vmul.f32 1.442695, %v2122_v12 }
 0x3c3   : > { %v2103_v15 = vpop.xlane.xlu1 %2102 }
 0x3c4   : > { %4002 = vpow2.f32 %v2130_v14  ;;  %v2123_v17 = vsub.f32 %v2090_v37, %v2103_v15 }
 0x3c6   : > { %v2132_v19 = vmul.f32 1.442695, %v2123_v17 }
 0x3c7   : > { %v2109_v20 = vpop.xlane.xlu1 %2108  ;;  %v2106_v18 = vpop.xlane.xlu0 %2105 }
 0x3c8   : > { %4004 = vpow2.f32 %v2132_v19  ;;  %v2125_v21 = vsub.f32 %v2092_v41, %v2109_v20  ;;  %v2124_v22 = vsub.f32 %v2091_v47, %v2106_v18 }
 0x3ca   : > { %v2136_v23 = vmul.f32 1.442695, %v2125_v21  ;;  %v2134_v24 = vmul.f32 1.442695, %v2124_v22  ;;  %v2579_v22 = vld [vmem:[%s4857_s4] sm:$0x3] }
 0x3cb   : > { %v2115_v27 = vpop.xlane.xlu1 %2114 }
 0x3cc   : > { %4006 = vpow2.f32 %v2136_v23  ;;  %v2127_v28 = vsub.f32 %v2094_v51, %v2115_v27 }
 0x3cd   : > { %4008 = vpow2.f32 %v2134_v24  ;;  %v2592_v24 = vsel %vm2590_vm5, %v2579_v22, 0 }
 0x3ce   : > { %v4003_v29 = vpop.eup %4002  ;;  %v2140_v30 = vmul.f32 1.442695, %v2127_v28 }
 0x3cf   : > { %v2121_v31 = vpop.xlane.xlu1 %2120  ;;  %v2112_v32 = vpop.xlane.xlu0 %2111  ;;  %v2146_v34 = vsel %vm2097_vm4, %v4003_v29, 0.0 }
 0x3d0   : > { %4010 = vpow2.f32 %v2140_v30  ;;  %v2129_v35 = vsub.f32 %v2096_v56, %v2121_v31  ;;  %v2126_v25 = vsub.f32 %v2093_v43, %v2112_v32  ;;  %2147 = vadd.xlane.f32.xlu0 %v2146_v34 }
 0x3d2   : > { %v4005_v26 = vpop.eup %4004  ;;  %v2144_v36 = vmul.f32 1.442695, %v2129_v35  ;;  %v2138_v37 = vmul.f32 1.442695, %v2126_v25  ;;  %v2582_v25 = vld [vmem:[%s4857_s4 + $0x6] sm:$0x3] }
 0x3d3   : > { %v2149_v38 = vsel %vm2097_vm4, %v4005_v26, 0.0 }
 0x3d4   : > { %4012 = vpow2.f32 %v2144_v36  ;;  %2150 = vadd.xlane.f32.xlu1 %v2149_v38 }
 0x3d5   : > { %4014 = vpow2.f32 %v2138_v37 }
 0x3d6   : > { %v4007_v39 = vpop.eup %4006 }
 0x3d7   : > { %v4009_v40 = vpop.eup %4008  ;;  %v2118_v41 = vpop.xlane.xlu0 %2117  ;;  %v2155_v42 = vsel %vm2097_vm4, %v4007_v39, 0.0 }
 0x3d8   : > { %v2128_v44 = vsub.f32 %v2095_v2, %v2118_v41  ;;  %2156 = vadd.xlane.f32.xlu1 %v2155_v42  ;;  %v2152_v46 = vsel %vm2097_vm4, %v4009_v40, 0.0  ;;  %v2583_v42 = vld [vmem:[%s4857_s4 + $0x8] sm:$0x3] }
 0x3d9   : > { %2153 = vadd.xlane.f32.xlu0 %v2152_v46 }
 0x3da   : > { %v4011_v47 = vpop.eup %4010  ;;  %v2142_v33 = vmul.f32 1.442695, %v2128_v44 }
 0x3db   : > { %v2161_v48 = vsel %vm2097_vm4, %v4011_v47, 0.0 }
 0x3dc   : > { %4016 = vpow2.f32 %v2142_v33  ;;  %2162 = vadd.xlane.f32.xlu1 %v2161_v48  ;;  %v2776_v33 = vsel %vm2590_vm5, %v2583_v42, 0  ;;  %v2584_v48 = vld [vmem:[%s4857_s4 + $0xa] sm:$0x3] }
 0x3de   : > { %v4623_v49 = vpop.eup %4012 }
 0x3df   : > { %v4015_v50 = vpop.eup %4014  ;;  %v2167_v51 = vsel %vm2097_vm4, %v4623_v49, 0.0 }
 0x3e0   : > { %2168 = vadd.xlane.f32.xlu1 %v2167_v51  ;;  %v2158_v52 = vsel %vm2097_vm4, %v4015_v50, 0.0 }
 0x3e1   : > { %2159 = vadd.xlane.f32.xlu0 %v2158_v52 }
 0x3e6   : > { %v4017_v53 = vpop.eup %4016 }
 0x3e7   : > { %v2164_v54 = vsel %vm2097_vm4, %v4017_v53, 0.0 }
 0x3e8   : > { %2165 = vadd.xlane.f32.xlu0 %v2164_v54  ;;  %v2822_v54 = vsel %vm2590_vm5, %v2584_v48, 0 }
 0x45d   : > { %v2148_v55 = vpop.xlane.xlu0 %2147 }
 0x45e   : > { %4018 = vrcp.f32 %v2148_v55 }
 0x461   : > { %v2151_v56 = vpop.xlane.xlu1 %2150 }
 0x462   : > { %4020 = vrcp.f32 %v2151_v56 }
 0x465   : > { %v2157_v58 = vpop.xlane.xlu1 %2156 }
 0x466   : > { %4022 = vrcp.f32 %v2157_v58  ;;  %v2154_v59 = vpop.xlane.xlu0 %2153  ;;  %v2585_v58 = vld [vmem:[%s4857_s4 + $0xc] sm:$0x3] }
 0x467   : > { %4024 = vrcp.f32 %v2154_v59 }
 0x468   : > { %v4019_v43 = vpop.eup %4018 }
 0x469   : > { %v2178_v60 = vmul.f32 %v4019_v43, %v4003_v29  ;;  %v2163_v61 = vpop.xlane.xlu1 %2162  ;;  %v2581_v29 = vld [vmem:[%s4857_s4 + $0x4] sm:$0x3] }
 0x46a   : > { %4026 = vrcp.f32 %v2163_v61  ;;  %v2684_v34 = vsel %vm2590_vm5, %v2581_v29, 0  ;;  %v2868_v61 = vsel %vm2590_vm5, %v2585_v58, 0 }
 0x46b   : > { %v2186_v62 = vpack.c.bf16 %v2178_v60, %v2178_v60 }
 0x46c   : > { %v4021_v63 = vpop.eup %4020 }
 0x46d   : > { %v2179_v0 = vmul.f32 %v4021_v63, %v4005_v26  ;;  %3780 = vmatmul.mubr.msk.bf16.vlgmr.msra.gmra.mrb[68].mxu0 %vm2097_vm4, %v2186_v62  ;;  %v2169_v10 = vpop.xlane.xlu1 %2168  ;;  %v2586_v62 = vld [vmem:[%s4857_s4 + $0xe] sm:$0x3] }
 0x46e   : > { %3790 = vmatpush3.bf16.msra.mxu0 %v4599_v3  ;;  %v2160_v1 = vpop.xlane.xlu0 %2159  ;;  %3791 = vmatprep.mubr.msk.bf16.mxu0 %vm4107_vm1, %v4106_v9 }
 0x46f   : > { %4028 = vrcp.f32 %v2160_v1  ;;  %v2187_v2 = vpack.c.bf16 %v2179_v0, %v2179_v0  ;;  %3801 = vmatprep.subr.bf16.mxu0 %v4106_v9 }
 0x470   : > { %v4023_v5 = vpop.eup %4022  ;;  %4030 = vrcp.f32 %v2169_v10 }
 0x471   : > { %v4025_v6 = vpop.eup %4024  ;;  %3786 = vmatmul.mubr.msk.bf16.vlgmr.msra.gmra.mrb[60].mxu1 %vm2097_vm4, %v2187_v2  ;;  %v2181_v3 = vmul.f32 %v4023_v5, %v4007_v39  ;;  %v2730_v39 = vsel %vm2590_vm5, %v2582_v25, 0 }
 0x472   : > { %v2180_v8 = vmul.f32 %v4025_v6, %v4009_v40  ;;  %3796 = vmatpush3.bf16.msra.mxu1 %v4582_v45  ;;  %3797 = vmatprep.mubr.msk.bf16.mxu1 %vm4107_vm1, %v4106_v9  ;;  %v2914_v6 = vsel %vm2590_vm5, %v2586_v62, 0 }
 0x473   : > { %3807 = vmatprep.subr.bf16.mxu1 %v4106_v9  ;;  %v2189_v14 = vpack.c.bf16 %v2181_v3, %v2181_v3 }
 0x474   : > { %v2188_v11 = vpack.c.bf16 %v2180_v8, %v2180_v8  ;;  %v4027_v15 = vpop.eup %4026 }
 0x475   : > { %v2166_v12 = vpop.xlane.xlu0 %2165  ;;  %v2183_v19 = vmul.f32 %v4027_v15, %v4011_v47 }
 0x476   : > { %3792 = vmatmul.mubr.msk.bf16.vlgmr.msra.gmra.mrb[72].mxu0 %vm2097_vm4, %v2188_v11  ;;  %4032 = vrcp.f32 %v2166_v12 }
 0x477   : > { %3802 = vmatpush3.bf16.msra.mxu0 %v4605_v13  ;;  %3803 = vmatprep.mubr.msk.bf16.mxu0 %vm4107_vm1, %v4106_v9  ;;  %v2191_v18 = vpack.c.bf16 %v2183_v19, %v2183_v19 }
 0x478   : > { %3813 = vmatprep.subr.bf16.mxu0 %v4106_v9 }
 0x479   : > { %v4029_v45 = vpop.eup %4028  ;;  %3798 = vmatmul.mubr.msk.bf16.vlgmr.msra.gmra.mrb[64].mxu1 %vm2097_vm4, %v2189_v14 }
 0x47a   : > { %v2182_v17 = vmul.f32 %v4029_v45, %v4015_v50  ;;  %3808 = vmatpush3.bf16.msra.mxu1 %v4592_v57  ;;  %3809 = vmatprep.mubr.msk.bf16.mxu1 %vm4107_vm1, %v4106_v9  ;;  %v4031_v20 = vpop.eup %4030 }
 0x47b   : > { %3819 = vmatprep.subr.bf16.mxu1 %v4106_v9 }
 0x47c   : > { %v2190_v13 = vpack.c.bf16 %v2182_v17, %v2182_v17 }
 0x47e   : > { %3804 = vmatmul.mubr.msk.bf16.vlgmr.msra.gmra.mrb[76].mxu0 %vm2097_vm4, %v2190_v13 }
 0x47f   : > { %3814 = vmatpush3.bf16.msra.mxu0 %v4608_v7  ;;  %3815 = vmatprep.mubr.msk.bf16.mxu0 %vm4107_vm1, %v4106_v9  ;;  %v2185_v7 = vmul.f32 %v4031_v20, %v4623_v49 }
 0x480   : > { %v4033_v21 = vpop.eup %4032  ;;  %3825 = vmatprep.subr.bf16.mxu0 %v4106_v9 }
 0x481   : > { %v2184_v57 = vmul.f32 %v4033_v21, %v4017_v53  ;;  %3810 = vmatmul.mubr.msk.bf16.vlgmr.msra.gmra.mrb[68].mxu1 %vm2097_vm4, %v2191_v18  ;;  %v2193_v27 = vpack.c.bf16 %v2185_v7, %v2185_v7 }
 0x482   : > { %3820 = vmatpush3.bf16.msra.mxu1 %v4602_v4  ;;  %3821 = vmatprep.mubr.msk.bf16.mxu1 %vm4107_vm1, %v4106_v9  ;;  %v2580_v4 = vld [vmem:[%s4857_s4 + $0x2] sm:$0x3] }
 0x483   : > { %v2192_v23 = vpack.c.bf16 %v2184_v57, %v2184_v57  ;;  %3831 = vmatprep.subr.bf16.mxu1 %v4106_v9  ;;  %v2638_v28 = vsel %vm2590_vm5, %v2580_v4, 0 }
 0x486   : > { %3816 = vmatmul.mubr.msk.bf16.vlgmr.msra.gmra.mrb[80].mxu0 %vm2097_vm4, %v2192_v23 }
 0x487   : > { %3826 = vmatpush3.bf16.msra.mxu0 %v2592_v24  ;;  %3827 = vmatprep.mubr.msk.bf16.mxu0 %vm4107_vm1, %v4106_v9 }
 0x488   : > { %3837 = vmatprep.subr.bf16.mxu0 %v4106_v9 }
 0x489   : > { %3822 = vmatmul.mubr.msk.bf16.vlgmr.msra.gmra.mrb[72].mxu1 %vm2097_vm4, %v2193_v27 }
 0x48a   : > { %3833 = vmatprep.mubr.msk.bf16.mxu1 %vm4107_vm1, %v4106_v9  ;;  %3832 = vmatpush3.bf16.msra.mxu1 %v2638_v28 }
 0x48b   : > { %3843 = vmatprep.subr.bf16.mxu1 %v4106_v9 }
 0x540   : > { %v2243_v30 = vpop.f32.mrb[68].mxu0 }
 0x541   : > { %v2571_v31 = vpack.c.bf16 %v2243_v30, %v2243_v30  ;;  %v3781_v32 = vpop.f32.mrb[69].mxu0 }
 0x542   : > { %v2246_v35 = vpop.f32.mrb[70].mxu0 }
 0x543   : > { %v3782_v26 = vpop.f32.mrb[71].mxu0  ;;  %3828 = vmatmul.mubr.msk.bf16.vlgmr.msra.gmra.mrb[84].mxu0 %vm1720_vm2, %v2571_v31 }
 0x544   : > { %v2289_v36 = vpop.f32.mrb[60].mxu1  ;;  %3838 = vmatpush3.bf16.msra.mxu0 %v2684_v34  ;;  %3839 = vmatprep.mubr.msk.bf16.mxu0 %vm4107_vm1, %v4106_v9 }
 0x545   : > { %v2572_v37 = vpack.c.bf16 %v2289_v36, %v2289_v36  ;;  %v3787_v38 = vpop.f32.mrb[61].mxu1  ;;  %3849 = vmatprep.subr.bf16.mxu0 %v4106_v9 }
 0x546   : > { %v2292_v40 = vpop.f32.mrb[62].mxu1 }
 0x547   : > { %v3788_v41 = vpop.f32.mrb[63].mxu1  ;;  %3834 = vmatmul.mubr.msk.bf16.vlgmr.msra.gmra.mrb[76].mxu1 %vm1720_vm2, %v2572_v37 }
 0x548   : > { %3844 = vmatpush3.bf16.msra.mxu1 %v2730_v39  ;;  %3845 = vmatprep.mubr.msk.bf16.mxu1 %vm4107_vm1, %v4106_v9 }
 0x549   : > { %v2335_v44 = vpop.f32.mrb[72].mxu0  ;;  %3855 = vmatprep.subr.bf16.mxu1 %v4106_v9 }
 0x54a   : > { %v2573_v46 = vpack.c.bf16 %v2335_v44, %v2335_v44  ;;  %v3793_v47 = vpop.f32.mrb[73].mxu0 }
 0x54b   : > { %v2338_v49 = vpop.f32.mrb[74].mxu0 }
 0x54c   : > { %v3794_v50 = vpop.f32.mrb[75].mxu0  ;;  %3840 = vmatmul.mubr.msk.bf16.vlgmr.msra.gmra.mrb[88].mxu0 %vm1720_vm2, %v2573_v46  ;;  %v2381_v51 = vpop.f32.mrb[64].mxu1 }
 0x54d   : > { %v2574_v52 = vpack.c.bf16 %v2381_v51, %v2381_v51  ;;  %v3799_v53 = vpop.f32.mrb[65].mxu1  ;;  %3850 = vmatpush3.bf16.msra.mxu0 %v2776_v33  ;;  %3851 = vmatprep.mubr.msk.bf16.mxu0 %vm4107_vm1, %v4106_v9 }
 0x54e   : > { %v2384_v55 = vpop.f32.mrb[66].mxu1  ;;  %3861 = vmatprep.subr.bf16.mxu0 %v4106_v9 }
 0x54f   : > { %v3800_v56 = vpop.f32.mrb[67].mxu1  ;;  %3846 = vmatmul.mubr.msk.bf16.vlgmr.msra.gmra.mrb[80].mxu1 %vm1720_vm2, %v2574_v52 }
 0x550   : > { %3856 = vmatpush3.bf16.msra.mxu1 %v2822_v54  ;;  %3857 = vmatprep.mubr.msk.bf16.mxu1 %vm4107_vm1, %v4106_v9  ;;  %v2973_v54 = vsub.s32 2, %v4239_v16 }
 0x551   : > { %v2427_v59 = vpop.f32.mrb[76].mxu0  ;;  %3867 = vmatprep.subr.bf16.mxu1 %v4106_v9 }
 0x552   : > { %v2575_v43 = vpack.c.bf16 %v2427_v59, %v2427_v59  ;;  %v3805_v60 = vpop.f32.mrb[77].mxu0  ;;  %v2978_v59 = vsub.s32 3, %v4239_v16 }
 0x553   : > { %v2430_v63 = vpop.f32.mrb[78].mxu0 }
 0x554   : > { %v3806_v0 = vpop.f32.mrb[79].mxu0  ;;  %3852 = vmatmul.mubr.msk.bf16.vlgmr.msra.gmra.mrb[92].mxu0 %vm1720_vm2, %v2575_v43  ;;  %v2473_v1 = vpop.f32.mrb[68].mxu1  ;;  %v4742_v63 = vld [vmem:[%s4860_s7] sm:$0xff] }
 0x555   : > { %v2576_v2 = vpack.c.bf16 %v2473_v1, %v2473_v1  ;;  %v3811_v5 = vpop.f32.mrb[69].mxu1  ;;  %3862 = vmatpush3.bf16.msra.mxu0 %v2868_v61  ;;  %3863 = vmatprep.mubr.msk.bf16.mxu0 %vm4107_vm1, %v4106_v9  ;;  %v2974_v0 = vrot.slane %v4742_v63, %v2973_v54 }
 0x556   : > { %v2476_v8 = vpop.f32.mrb[70].mxu1  ;;  %3873 = vmatprep.subr.bf16.mxu0 %v4106_v9 }
 0x557   : > { %v3812_v10 = vpop.f32.mrb[71].mxu1  ;;  %3858 = vmatmul.mubr.msk.bf16.vlgmr.msra.gmra.mrb[84].mxu1 %vm1720_vm2, %v2576_v2 }
 0x558   : > { %3868 = vmatpush3.bf16.msra.mxu1 %v2914_v6  ;;  %3869 = vmatprep.mubr.msk.bf16.mxu1 %vm4107_vm1, %v4106_v9  ;;  %v2979_v6 = vrot.slane %v4742_v63, %v2978_v59 }
 0x559   : > { %v2519_v3 = vpop.f32.mrb[80].mxu0  ;;  %3881 = vmatprep.subr.bf16.mxu1 %v4106_v9 }
 0x55a   : > { %v2577_v11 = vpack.c.bf16 %v2519_v3, %v2519_v3  ;;  %v3817_v12 = vpop.f32.mrb[81].mxu0 }
 0x55b   : > { %v2522_v14 = vpop.f32.mrb[82].mxu0  ;;  %v4041_v12 = vld [vmem:[%s4212_s25] sm:$0xff]  ;;  %s3228_s25 = sshll.u32 %s323_s21, 4  ;;  %s4812_s25 = int_to_ptr.vmem [resolvable:$true] %s3228_s25 }
 0x55c   : > { %v3818_v15 = vpop.f32.mrb[83].mxu0  ;;  %3864 = vmatmul.mubr.msk.bf16.vlgmr.msra.gmra.mrb[96].mxu0 %vm1720_vm2, %v2577_v11  ;;  %v2565_v45 = vpop.f32.mrb[72].mxu1  ;;  %s4042_s13 = scalar_lea.vmem %s4812_s25, 128  ;;  %p4049_p0 = scmp.lt.s32.totalorder %s4812_s25, %s4047_s28 }
 0x55d   : > { %v2578_v17 = vpack.c.bf16 %v2565_v45, %v2565_v45  ;;  %v3823_v19 = vpop.f32.mrb[73].mxu1  ;;  %3877 = vmatprep.mubr.msk.bf16.mxu0 %vm4107_vm1, %v4106_v9  ;;  %p4043_p11 = scmp.ne.s32.totalorder %s4812_s25, %s4042_s13  ;;  %p4050_p1 = scmp.lt.s32.totalorder %s4048_s29, %s4042_s13 }
 0x55e   : > { %v2568_v13 = vpop.f32.mrb[74].mxu1 }
 0x55f   : > { %v3824_v20 = vpop.f32.mrb[75].mxu1  ;;  %3870 = vmatmul.mubr.msk.bf16.vlgmr.msra.gmra.mrb[88].mxu1 %vm1720_vm2, %v2578_v17  ;;  %p4044_p12 = pnand %p4043_p11, %p4197_p5  ;;  %p4051_p2 = por %p4050_p1, %p4049_p0 }
 0x560   : > { %3897 = vmatprep.mubr.msk.bf16.mxu1 %vm4107_vm1, %v4106_v9 }
 0x561   : > { %p4045_p13 = pneg %p4044_p12 }
 0x563   : > { %p4052_p3 = pnand %p4051_p2, %p4045_p13 }
 0x616   : > { %v2628_v18 = vpop.f32.mrb[84].mxu0 }
 0x617   : > { %v3829_v21 = vpop.f32.mrb[85].mxu0  ;;  %v2956_v23 = vsel %vm331_vm0, %v2628_v18, 0.0  ;;  %v3990_v18 = vld [vmem:[%s4858_s5] sm:$0xff]  }
 0x618   : > { %v2631_v57 = vpop.f32.mrb[86].mxu0  ;;  %3874 = vmatpush3.bf16.msra.mxu0 %v3990_v18  ;;  %v3991_v21 = vld [vmem:[%s4858_s5 + $0x8] sm:$0xff]  }
 0x619   : > { %v3830_v22 = vpop.f32.mrb[87].mxu0  ;;  %3875 = vmatprep.subr.bf16.mxu0 %v4106_v9 }
 0x61a   : > { %v2674_v7 = vpop.f32.mrb[76].mxu1 }
 0x61b   : > { %v2957_v24 = vsel %vm331_vm0, %v2674_v7, 0.0  ;;  %v3835_v27 = vpop.f32.mrb[77].mxu1 }
 0x61c   : > { %v2958_v4 = vadd.f32 %v2957_v24, %v2956_v23  ;;  %v2677_v28 = vpop.f32.mrb[78].mxu1  ;;  %3876 = vmatpush3.bf16.msra.mxu0 %v3991_v21  ;;  %v2997_v23 = vsub.s32 4, %v4239_v16  ;;  %v3002_v24 = vsub.s32 5, %v4239_v16 }
 0x61d   : > { %v3836_v29 = vpop.f32.mrb[79].mxu1 }
 0x61e   : > { %v2998_v27 = vrot.slane %v4742_v63, %v2997_v23  ;;  %v3003_v29 = vrot.slane %v4742_v63, %v3002_v24 }
 0x61f   : > { %v2720_v30 = vpop.f32.mrb[88].mxu0 }
 0x620   : > { %v2959_v31 = vsel %vm331_vm0, %v2720_v30, 0.0  ;;  %v3841_v32 = vpop.f32.mrb[89].mxu0 }
 0x621   : > { %v2960_v34 = vadd.f32 %v2959_v31, %v2958_v4  ;;  %v2723_v35 = vpop.f32.mrb[90].mxu0 }
 0x622   : > { %v3842_v25 = vpop.f32.mrb[91].mxu0  ;;  %v2766_v26 = vpop.f32.mrb[80].mxu1  ;;  %v3993_v35 = vld [vmem:[%s4859_s6 + $0x8] sm:$0xff]  }
 0x623   : > { %v2961_v36 = vsel %vm331_vm0, %v2766_v26, 0.0  ;;  %v3847_v37 = vpop.f32.mrb[81].mxu1  ;;  %v3994_v25 = vld [vmem:[%s4859_s6 + $0x10] sm:$0xff]   ;;  %v3995_v26 = vld [vmem:[%s4859_s6 + $0x18] sm:$0xff]  }
 0x624   : > { %v2962_v38 = vadd.f32 %v2961_v36, %v2960_v34  ;;  %v2769_v39 = vpop.f32.mrb[82].mxu1  ;;  %v3992_v34 = vld [vmem:[%s4859_s6] sm:$0xff]   ;;  %v3997_v37 = vld [vmem:[%s4859_s6 + $0x28] sm:$0xff]  }
 0x625   : > { %v3848_v40 = vpop.f32.mrb[83].mxu1  ;;  %3882 = vmatpush3.bf16.msra.mxu1 %v3992_v34  ;;  %v3996_v36 = vld [vmem:[%s4859_s6 + $0x20] sm:$0xff]   ;;  %v3999_v39 = vld [vmem:[%s4859_s6 + $0x38] sm:$0xff]  }
 0x626   : > { %3883 = vmatprep.subr.bf16.mxu1 %v4106_v9  ;;  %v3389_v40 = vld [vmem:[%s4861_s8] ss:$0 sm:$0xff] }
 0x627   : > { %v2812_v41 = vpop.f32.mrb[92].mxu0 }
 0x628   : > { %v2963_v42 = vsel %vm331_vm0, %v2812_v41, 0.0  ;;  %v3853_v44 = vpop.f32.mrb[93].mxu0 }
 0x629   : > { %v2964_v46 = vadd.f32 %v2963_v42, %v2962_v38  ;;  %v2815_v47 = vpop.f32.mrb[94].mxu0  ;;  %3884 = vmatpush3.bf16.msra.mxu1 %v3993_v35  ;;  %v3998_v38 = vld [vmem:[%s4859_s6 + $0x30] sm:$0xff]  }
 0x62a   : > { %v3854_v33 = vpop.f32.mrb[95].mxu0  ;;  %v2858_v48 = vpop.f32.mrb[84].mxu1  ;;  %3885 = vmatprep.subr.bf16.mxu1 %v4106_v9 }
 0x62b   : > { %v2965_v49 = vsel %vm331_vm0, %v2858_v48, 0.0  ;;  %v3859_v50 = vpop.f32.mrb[85].mxu1 }
 0x62c   : > { %v2966_v51 = vadd.f32 %v2965_v49, %v2964_v46  ;;  %v2861_v52 = vpop.f32.mrb[86].mxu1 }
 0x62d   : > { %v3860_v53 = vpop.f32.mrb[87].mxu1  ;;  %3886 = vmatpush3.bf16.msra.mxu1 %v3994_v25 }
 0x62e   : > { %3887 = vmatprep.subr.bf16.mxu1 %v4106_v9 }
 0x62f   : > { %v2904_v55 = vpop.f32.mrb[96].mxu0 }
 0x630   : > { %v2967_v56 = vsel %vm331_vm0, %v2904_v55, 0.0  ;;  %v3865_v58 = vpop.f32.mrb[97].mxu0 }
 0x631   : > { %v2968_v43 = vadd.f32 %v2967_v56, %v2966_v51  ;;  %v2907_v60 = vpop.f32.mrb[98].mxu0  ;;  %3888 = vmatpush3.bf16.msra.mxu1 %v3995_v26 }
 0x632   : > { %v3866_v61 = vpop.f32.mrb[99].mxu0  ;;  %v2950_v62 = vpop.f32.mrb[88].mxu1  ;;  %3889 = vmatprep.subr.bf16.mxu1 %v4106_v9 }
 0x633   : > { %v2969_v1 = vsel %vm331_vm0, %v2950_v62, 0.0  ;;  %v3871_v2 = vpop.f32.mrb[89].mxu1 }
 0x634   : > { %v2970_v5 = vadd.f32 %v2969_v1, %v2968_v43  ;;  %v2953_v8 = vpop.f32.mrb[90].mxu1 }
 0x635   : > { %v3872_v10 = vpop.f32.mrb[91].mxu1  ;;  %3890 = vmatpush3.bf16.msra.mxu1 %v3996_v36 }
 0x636   : > { %v2975_v3 = vadd.f32 %v2974_v0, %v2970_v5  ;;  %3891 = vmatprep.subr.bf16.mxu1 %v4106_v9 }
 0x638   : > { %v2980_v11 = vmul.f32 %v2979_v6, %v2975_v3 }
 0x639   : > { %3892 = vmatpush3.bf16.msra.mxu1 %v3997_v37 }
 0x63a   : > { %v4748_v14 = vadd.f32 %v4041_v12, %v2980_v11  ;;  %3893 = vmatprep.subr.bf16.mxu1 %v4106_v9  ;;  %v3117_v12 = vsub.s32 6, %v4239_v16 }
 0x63c   : > { %v2982_v15 = vsel %vm331_vm0, %v4748_v14, 0.0 }
 0x63d   : > { %2983 = vadd.xlane.f32.xlu0 %v2982_v15  ;;  %3894 = vmatpush3.bf16.msra.mxu1 %v3998_v38  ;;  %v3209_v15 = vsub.s32 7, %v4239_v16 }
 0x63e   : > { %3895 = vmatprep.subr.bf16.mxu1 %v4106_v9 }
 0x641   : > { %3896 = vmatpush3.bf16.msra.mxu1 %v3999_v39 }
 0x6ca   : > { %v2984_v45 = vpop.xlane.xlu0 %2983 }
 0x6cb   : > { %v2985_v17 = vmul.f32 0.03125, %v2984_v45  ;;  %v3118_v45 = vrot.slane %v4742_v63, %v3117_v12 }
 0x6cd   : > { %v2986_v19 = vsub.f32 %v4748_v14, %v2985_v17  ;;  %v3210_v17 = vrot.slane %v4742_v63, %v3209_v15 }
 0x6cf   : > { %v2987_v13 = vmul.f32 %v2986_v19, %v2986_v19 }
 0x6d1   : > { %v2988_v20 = vsel %vm331_vm0, %v2987_v13, 0.0 }
 0x6d2   : > { %2989 = vadd.xlane.f32.xlu1 %v2988_v20 }
 0x75f   : > { %v2990_v57 = vpop.xlane.xlu1 %2989 }
 0x760   : > { %v2991_v22 = vmul.f32 0.03125, %v2990_v57 }
 0x762   : > { %v2992_v7 = vadd.f32 1e-05, %v2991_v22 }
 0x764   : > { %4034 = vrsqrt.f32 %v2992_v7 }
 0x76e   : > { %v4035_v4 = vpop.eup %4034 }
 0x76f   : > { %v2994_v28 = vmul.f32 %v4035_v4, %v2986_v19 }
 0x771   : > { %v2999_v30 = vmul.f32 %v2998_v27, %v2994_v28 }
 0x773   : > { %v3004_v31 = vadd.f32 %v3003_v29, %v2999_v30 }
 0x775   : > { %v3005_v32 = vpack.c.bf16 %v3004_v31, %v3004_v31 }
 0x777   : > { %3878 = vmatmul.mubr.msk.bf16.vlgmr.msra.gmra.mrb[100].mxu0 %vm331_vm0, %v3005_v32 }
 0x84a   : > { %v3066_v41 = vpop.f32.mrb[100].mxu0 }
 0x84b   : > { %v3067_v42 = vadd.f32 %v3389_v40, %v3066_v41  ;;  %v3879_v44 = vpop.f32.mrb[101].mxu0 }
 0x84c   : > { %v3069_v46 = vpop.f32.mrb[102].mxu0 }
 0x84d   : > { %v3073_v47 = vmul.f32 0.70710677, %v3067_v42  ;;  %v3880_v33 = vpop.f32.mrb[103].mxu0  ;;  %v3072_v8 = vmul.f32 0.5, %v3067_v42 }
 0x84f   : > { %v3074_v48 = vand.u32 2147483647, %v3073_v47  ;;  %vm3093_vm6 = vcmp.ge.f32.partialorder %v3073_v47, 0.0 }
 0x851   : > { %v3075_v49 = vmul.f32 0.3275911, %v3074_v48  ;;  %v3087_v9 = vsub.f32 0.0, %v3074_v48 }
 0x853   : > { %v3076_v50 = vadd.f32 1.0, %v3075_v49  ;;  %v3088_v52 = vmul.f32 %v3087_v9, %v3074_v48 }
 0x855   : > { %4036 = vrcp.f32 %v3076_v50  ;;  %v3089_v55 = vmul.f32 1.442695, %v3088_v52 }
 0x857   : > { %4038 = vpow2.f32 %v3089_v55 }
 0x85f   : > { %v4037_v51 = vpop.eup %4036 }
 0x860   : > { %v3078_v53 = vmul.f32 1.0614054, %v4037_v51 }
 0x861   : > { %v4039_v0 = vpop.eup %4038 }
 0x862   : > { %v3079_v54 = vadd.f32 -1.4531521, %v3078_v53 }
 0x864   : > { %v3080_v56 = vmul.f32 %v4037_v51, %v3079_v54 }
 0x866   : > { %v3081_v58 = vadd.f32 1.4214138, %v3080_v56 }
 0x868   : > { %v3082_v59 = vmul.f32 %v4037_v51, %v3081_v58 }
 0x86a   : > { %v3083_v43 = vadd.f32 -0.28449672, %v3082_v59 }
 0x86c   : > { %v3084_v60 = vmul.f32 %v4037_v51, %v3083_v43 }
 0x86e   : > { %v3085_v61 = vadd.f32 0.2548296, %v3084_v60 }
 0x870   : > { %v3086_v62 = vmul.f32 %v4037_v51, %v3085_v61 }
 0x872   : > { %v3091_v1 = vmul.f32 %v4039_v0, %v3086_v62 }
 0x874   : > { %v3092_v2 = vsub.f32 1.0, %v3091_v1 }
 0x876   : > { %v3094_v5 = vsub.f32 0.0, %v3092_v2 }
 0x878   : > { %v3095_v6 = vsel %vm3093_vm6, %v3092_v2, %v3094_v5 }
 0x879   : > { %v3096_v10 = vadd.f32 1.0, %v3095_v6 }
 0x87b   : > { %v3097_v3 = vmul.f32 %v3096_v10, %v3072_v8 }
 0x87d   : > { %v3098_v11 = vpack.c.bf16 %v3097_v3, %v3097_v3 }
 0x87f   : > { %3898 = vmatmul.mubr.bf16.vlgmr.msra.gmra.mrb[92].mxu1 %v3098_v11 }
 0x952   : > { %v3201_v19 = vpop.f32.mrb[92].mxu1 }
 0x953   : > { %v3202_v13 = vadd.f32 %v3201_v19, %v3118_v45  ;;  %v3899_v20 = vpop.f32.mrb[93].mxu1 }
 0x954   : > { %v3204_v18 = vpop.f32.mrb[94].mxu1 }
 0x955   : > { %v3211_v21 = vmul.f32 %v3210_v17, %v3202_v13  ;;  %v3900_v57 = vpop.f32.mrb[95].mxu1 }
 0x957   : > { %v3212_v22 = vadd.f32 %v3211_v21, %v4748_v14 }
 0x959   : > { %3213 = vst.msk [vmem:[%s323_s21] sm:$0xff] %vm331_vm0, %v3212_v22 }
 0x95a   : > { %4055 = shalt.err (!%p4052_p3)
}
 0x95b   : > { %s4056_s14 = scalar_lea.hbm %s4810_s24, 128  ;;  %s4060_s21 = scalar_lea.hbm %s4862_s9, 256 }
 0x95c   : > { %p4057_p4 = scmp.ne.s32.totalorder %s4810_s24, %s4056_s14  ;;  %p4061_p9 = scmp.lt.u32.totalorder %s4810_s24, %s4862_s9 }
 0x95d   : > { %p4062_p10 = scmp.lt.u32.totalorder %s4060_s21, %s4056_s14  ;;  %p4064_p12 = scmp.lt.u32.totalorder %s4056_s14, %s4810_s24 }
 0x95e   : > { %p4058_p7 = pnand %p4057_p4, %p4197_p5 }
 0x95f   : > { %p4063_p11 = por %p4062_p10, %p4061_p9 }
 0x960   : > { %p4059_p8 = pneg %p4058_p7 }
 0x961   : > { %p4065_p13 = por %p4064_p12, %p4063_p11 }
 0x963   : > { %p4066_p0 = pnand %p4065_p13, %p4059_p8 }
 0x965   : > { %4069 = shalt.err (!%p4066_p0)
}
 0x966   : > { %3901 = dma.vmem_to_hbm [thread:$0]  (%p4197_p5), %s4812_s25, 128, %s4810_s24, %s3215_s26  }
 0x967 PF: > { %p3907_p1 = scmp.ge.s32.totalorder %s4104_s12, 2  ;;  %s3240_s13 = sand.u32 1, %s4092_s30  }
 0x968   : > { %s3241_s27 = scalar_lea.sflag [#allocation3], %s3240_s13 }
 0x969   : > { %p3904_p2 = pnand %p3907_p1, %p4201_p6 }
 0x96b   : > { %4087 = dma.done.wait (!%p3904_p2), %s3241_s27, 128  }
 0x96c   : > { %4089 = vsyncadd (!%p3904_p2), %s3241_s27, 4294967168  ;;  %p19_p3 = scmp.ge.s32.totalorder %s4184_s15, 4   ;;  %s4865_s30 = smov %s4096_s10 }
 0x96d   : > { %s4866_s10 = smov %s4100_s11  ;;  %s4867_s11 = smov %s4195_s18 }
 0x96e   : > { %s4868_s12 = smov %s4184_s15  ;;  %21 = sbr.rel (!%p19_p3) target bundleno = 3 (0x3), region = 91 }
 0x975   :  { %3246 = vsyncpa [#allocation3], 1 }
 0x976   :  { %3248 = vsyncpa [#allocation3 + $0x1], 1 }

</bundles_post_ra>
